<compile_context>
chip_gen: v5e
topology: v5e:2x2
jax: 0.10.0
libtpu: 0.0.40
codegen_flags: <defaults>
</compile_context>

<pallas_src>
import functools
import math

import jax
import jax.numpy as jnp
import numpy as np
from jax import lax
from jax.experimental import pallas as pl
from jax.experimental.pallas import tpu as pltpu


def _round_up(x, m):
    return -(-x // m) * m


def _gen_config():
    """Per-TPU-generation tiling knobs (best-effort device_kind sniffing)."""
    kind = ""
    try:
        kind = jax.devices()[0].device_kind.lower()
    except Exception:
        pass
    if "v5 lite" in kind or "v5e" in kind or "v5lite" in kind:
        # 16 MiB default scoped VMEM; 4x128x128 MXU -> native N width is 128.
        return dict(tcout_pref=128, in_cap=2 << 20, budget=20 << 20, vmem_limit=48 << 20)
    if "v6" in kind:
        # 128 MiB physical VMEM: bigger tiles amortize per-step overhead.
        return dict(tcout_pref=256, in_cap=8 << 20, budget=48 << 20, vmem_limit=96 << 20)
    if "v7" in kind or "7x" in kind:
        # 64 MiB physical VMEM per TensorCore: stay well under it.
        return dict(tcout_pref=256, in_cap=6 << 20, budget=36 << 20, vmem_limit=56 << 20)
    return dict(tcout_pref=256, in_cap=4 << 20, budget=28 << 20, vmem_limit=48 << 20)


def _doconv_fused_kernel(x_ref, w_ref, o_ref, *, KH, KW, sh, sw, dh, dw,
                         th, th_in, Wo, Cin):
    """Thin-Cin path: fold all KH*KW taps into the contraction dim (1 matmul).

    x_ref: (th_in, Wp_pad, Cin)   padded-input rows for this tile
    w_ref: (KH*KW*Cin, tcout)     tap-major packed weights (Cout lane-padded)
    o_ref: (th*Wo, tcout)
    """
    M = th * Wo
    K = KH * KW * Cin
    if sh == 1 and sw == 1:
        # One sublane-shifted width slice per kw (hoisted out of the kh loop);
        # per-kh row slices below are leading-dim slices -> layout-free.
        cols = [x_ref[:, kw * dw:kw * dw + Wo, :] for kw in range(KW)]
        parts = [cols[kw][kh * dh:kh * dh + th]
                 for kh in range(KH) for kw in range(KW)]
    else:
        xb = x_ref[...]
        cols = [lax.slice(xb, (0, kw * dw, 0),
                          (th_in, kw * dw + (Wo - 1) * sw + 1, Cin), (1, sw, 1))
                for kw in range(KW)]
        parts = [lax.slice(cols[kw], (kh * dh, 0, 0),
                           (kh * dh + (th - 1) * sh + 1, Wo, Cin), (sh, 1, 1))
                 for kh in range(KH) for kw in range(KW)]
    a = jnp.concatenate(parts, axis=-1).reshape(M, K)
    acc = jnp.dot(a, w_ref[...], preferred_element_type=jnp.float32)
    o_ref[...] = acc.astype(o_ref.dtype)


def _doconv_per_tap_kernel(x_ref, w_ref, o_ref, *, KH, KW, sh, sw, dh, dw,
                           th, th_in, Wo, Cin):
    """Wide-Cin path: one (M,Cin)x(Cin,tcout) matmul per tap, accumulated in a
    local traced value -> a single o_ref write, no per-tap VMEM RMW.

    x_ref: (th_in, Wp_pad, Cin)
    w_ref: (KH*KW, Cin, tcout)
    o_ref: (th*Wo, tcout)
    """
    M = th * Wo
    unit = (sh == 1 and sw == 1)
    xb = None if unit else x_ref[...]
    acc = None
    for kw in range(KW):
        w0 = kw * dw
        if unit:
            xw = x_ref[:, w0:w0 + Wo, :]          # one sublane shift per kw
        else:
            xw = lax.slice(xb, (0, w0, 0),
                           (th_in, w0 + (Wo - 1) * sw + 1, Cin), (1, sw, 1))
        for kh in range(KH):
            h0 = kh * dh
            if unit:
                win = xw[h0:h0 + th]              # leading-dim slice, layout-free
            else:
                win = lax.slice(xw, (h0, 0, 0),
                                (h0 + (th - 1) * sh + 1, Wo, Cin), (sh, 1, 1))
            tap = jnp.dot(win.reshape(M, Cin), w_ref[kh * KW + kw],
                          preferred_element_type=jnp.float32)
            acc = tap if acc is None else acc + tap
    o_ref[...] = acc.astype(o_ref.dtype)


def doconv2d_eval_forward(x_nchw, W, stride=(1, 1), padding=(1, 1),
                          dilation=(1, 1), groups=1, *, compute_dtype=None,
                          out_dtype=None, nchw_output=True, th=None, tcout=None):
    """Semantics of DOConv2d_eval.forward (padding_mode='zeros', bias=None)."""
    if isinstance(stride, int):
        stride = (stride, stride)
    if isinstance(padding, int):
        padding = (padding, padding)
    if isinstance(dilation, int):
        dilation = (dilation, dilation)
    if groups != 1:
        # TODO(synk): grouped / depthwise DO-Conv (groups != 1) not implemented.
        raise NotImplementedError("groups != 1 not supported")

    N, Cin, H, Wd = x_nchw.shape
    Cout, Cin_w, KH, KW = W.shape
    assert Cin_w == Cin
    sh, sw = stride
    ph, pw = padding
    dh, dw = dilation
    Ho = (H + 2 * ph - dh * (KH - 1) - 1) // sh + 1
    Wo = (Wd + 2 * pw - dw * (KW - 1) - 1) // sw + 1
    Hp, Wp = H + 2 * ph, Wd + 2 * pw

    # Explicit compute dtype: keep the activation dtype (cast W down) instead
    # of silently promoting to f32; accumulation stays f32 on the MXU.
    if compute_dtype is None:
        compute_dtype = x_nchw.dtype
    compute_dtype = jnp.dtype(compute_dtype)
    out_dtype = compute_dtype if out_dtype is None else jnp.dtype(out_dtype)
    itemsize = compute_dtype.itemsize

    cfg = _gen_config()
    LANE, SUB = 128, 8

    # ---- lane/sublane-aligned tile geometry --------------------------------
    Wo_pad = _round_up(Wo, SUB)                   # keeps M = th*Wo_pad 8-aligned
    Wp_need = (Wo_pad - 1) * sw + dw * (KW - 1) + 1
    Wp_pad = max(Wp, Wp_need)                     # zero-extend width if needed

    Cout_pad = _round_up(Cout, LANE)
    if tcout is None:
        w_full_bytes = KH * KW * Cin * Cout_pad * itemsize
        if w_full_bytes <= (4 << 20):
            tcout = Cout_pad                       # nJ=1: weights DMA'd once
        else:
            tcout = min(cfg["tcout_pref"], Cout_pad)
            Cout_pad = _round_up(Cout, tcout)
    else:
        assert tcout % LANE == 0
        Cout_pad = _round_up(Cout, tcout)
    nJ = Cout_pad // tcout

    Kdim = KH * KW * Cin
    fuse = Kdim <= 768                             # thin channels: 1 matmul/tile

    # ---- output-row tile sizing --------------------------------------------
    target_m, m_cap = 1024, 2048
    bytes_in_row = Wp_pad * Cin * itemsize

    def _vmem_need(th_):
        th_in_ = (th_ - 1) * sh + dh * (KH - 1) + 1
        m = th_ * Wo_pad
        need = 2 * th_in_ * bytes_in_row                       # input (2 bufs)
        need += 2 * Kdim * tcout * itemsize                    # weights (2 bufs)
        need += 2 * m * tcout * out_dtype.itemsize             # output (2 bufs)
        need += m * tcout * 4                                  # f32 matmul result
        need += m * Kdim * itemsize if fuse else m * tcout * 4
        return need + (2 << 20)

    if th is None:
        th = max(1, min(Ho, max(1, target_m // Wo_pad), max(1, m_cap // Wo_pad)))
        max_in_rows = max(dh * (KH - 1) + 1, cfg["in_cap"] // max(1, bytes_in_row))
        th = max(1, min(th, (max_in_rows - dh * (KH - 1) - 1) // sh + 1))
        if -(-Ho // th) > 1:
            # Prefer the single-row-tile path (pure slice, no halo gather) when
            # the whole padded image + output tile still fit the VMEM budget.
            if Hp * bytes_in_row <= 2 * cfg["in_cap"] and Ho * Wo_pad <= 2 * m_cap:
                th = Ho
        while th > 1 and _vmem_need(th) > cfg["budget"]:
            th = max(1, th // 2)
        # TODO(synk): also tile the Wo axis for very wide images (th==1 floor).
    th = max(1, min(th, Ho))
    nH = -(-Ho // th)
    Ho_pad = nH * th
    th_in = (th - 1) * sh + dh * (KH - 1) + 1
    M = th * Wo_pad

    # ---- input: NCHW -> NHWC (channels on lanes), zero-pad H/W --------------
    x = jnp.transpose(x_nchw, (0, 2, 3, 1)).astype(compute_dtype)
    xpad = jnp.pad(x, ((0, 0), (ph, ph), (pw, pw + (Wp_pad - Wp)), (0, 0)))

    if nH == 1:
        x_tiles = xpad[:, None, :th_in, :, :]      # pure slice/reshape, no copy
    else:
        # TODO(synk): replace this XLA halo gather with an overlapping-window
        # manual DMA (memory_space=pl.ANY + pltpu.make_async_copy) so very
        # large images avoid one extra HBM read+write pass over the activation.
        row_idx = (jnp.arange(nH) * (th * sh))[:, None] + jnp.arange(th_in)[None, :]
        row_idx = jnp.minimum(row_idx, Hp - 1)     # clamp tail-tile halo
        x_tiles = xpad[:, row_idx]                 # (N, nH, th_in, Wp_pad, Cin)

    # ---- weights: (Cout,Cin,KH,KW) -> tap-major, lane-padded ---------------
    Wc = W.astype(compute_dtype)
    if fuse:
        w = jnp.transpose(Wc, (2, 3, 1, 0)).reshape(Kdim, Cout)
        if Cout_pad != Cout:
            w = jnp.pad(w, ((0, 0), (0, Cout_pad - Cout)))
        w_spec = pl.BlockSpec((Kdim, tcout), lambda n, i, j: (0, j))
        kernel = functools.partial(_doconv_fused_kernel, KH=KH, KW=KW, sh=sh,
                                   sw=sw, dh=dh, dw=dw, th=th, th_in=th_in,
                                   Wo=Wo_pad, Cin=Cin)
    else:
        w = jnp.transpose(Wc, (2, 3, 1, 0)).reshape(KH * KW, Cin, Cout)
        if Cout_pad != Cout:
            w = jnp.pad(w, ((0, 0), (0, 0), (0, Cout_pad - Cout)))
        w_spec = pl.BlockSpec((KH * KW, Cin, tcout), lambda n, i, j: (0, 0, j))
        kernel = functools.partial(_doconv_per_tap_kernel, KH=KH, KW=KW, sh=sh,
                                   sw=sw, dh=dh, dw=dw, th=th, th_in=th_in,
                                   Wo=Wo_pad, Cin=Cin)

    flops = 2 * N * Ho * Wo * KH * KW * Cin * Cout
    bytes_accessed = (x_tiles.size * itemsize + w.size * itemsize
                      + N * nH * M * Cout_pad * out_dtype.itemsize)
    cost = pl.CostEstimate(flops=int(flops), transcendentals=0,
                           bytes_accessed=int(bytes_accessed))

    out = pl.pallas_call(
        kernel,
        out_shape=jax.ShapeDtypeStruct((N, nH, M, Cout_pad), out_dtype),
        grid_spec=pltpu.PrefetchScalarGridSpec(
            num_scalar_prefetch=0,
            grid=(N, nH, nJ),
            in_specs=[
                # Input tile is constant across the innermost Cout axis j, so
                # the pipeliner fetches it once per (n, i).
                pl.BlockSpec((None, None, th_in, Wp_pad, Cin),
                             lambda n, i, j: (n, i, 0, 0, 0)),
                w_spec,
            ],
            out_specs=pl.BlockSpec((None, None, M, tcout),
                                   lambda n, i, j: (n, i, 0, j)),
        ),
        compiler_params=pltpu.CompilerParams(
            # Keep the Cout axis off the megacore shard (on v7x the 2 TCs would
            # otherwise each re-DMA the same input row tile).
            dimension_semantics=("parallel", "parallel", "arbitrary"),
            vmem_limit_bytes=int(cfg["vmem_limit"])),
        cost_estimate=cost,
    )(x_tiles, w)

    # (N, nH, th*Wo_pad, Cout_pad) row-major == (N, Ho_pad, Wo_pad, Cout_pad):
    # this reshape is metadata-only.
    out = out.reshape(N, Ho_pad, Wo_pad, Cout_pad)[:, :Ho, :Wo, :Cout]
    if not nchw_output:
        return out                                  # NHWC for fused consumers
    return jnp.transpose(out, (0, 3, 1, 2))


def init_weights(key, in_channels, out_channels, kernel_size=3):
    # kaiming_uniform_(a=sqrt(5)) on (Cout, Cin, KH, KW):
    # bound = sqrt(3) * sqrt(2/(1+a^2)) / sqrt(fan_in) = 1/sqrt(fan_in)
    fan_in = in_channels * kernel_size * kernel_size
    bound = 1.0 / math.sqrt(fan_in)
    shape = (out_channels, in_channels, kernel_size, kernel_size)
    return jax.random.uniform(key, shape, jnp.float32, minval=-bound, maxval=bound)


def _reference(x, W, stride=(1, 1), padding=(1, 1), dilation=(1, 1)):
    return lax.conv_general_dilated(
        x, W, window_strides=stride,
        padding=((padding[0], padding[0]), (padding[1], padding[1])),
        rhs_dilation=dilation,
        dimension_numbers=("NCHW", "OIHW", "NCHW"),
        precision=lax.Precision.HIGHEST)


if __name__ == "__main__":
    key = jax.random.PRNGKey(0)
    k1, k2, k3, k4, k5, k6 = jax.random.split(key, 6)

    # 1) Module defaults: kernel=3, stride=1, padding=1 (thin Cin ->
    #    fused-taps path, single row tile, nJ=1).
    x1 = jax.random.normal(k1, (2, 4, 16, 16), dtype=jnp.float32)
    W1 = init_weights(k2, 4, 8, 3)
    o1 = jax.block_until_ready(doconv2d_eval_forward(x1, W1))
    np.testing.assert_allclose(np.asarray(o1), np.asarray(_reference(x1, W1)),
                               rtol=1e-4, atol=1e-4)

    # 2) Non-multiple-of-8 output width (exercises Wo / width zero-padding).
    x2 = jax.random.normal(k3, (1, 8, 20, 20), dtype=jnp.float32)
    W2 = init_weights(k4, 8, 8, 3)
    o2 = jax.block_until_ready(doconv2d_eval_forward(x2, W2))
    np.testing.assert_allclose(np.asarray(o2), np.asarray(_reference(x2, W2)),
                               rtol=1e-4, atol=1e-4)

    # 3) Multi-row-tile path (explicit small th -> halo tiles + Ho padding).
    x3 = jax.random.normal(k5, (1, 4, 32, 32), dtype=jnp.float32)
    W3 = init_weights(k6, 4, 16, 3)
    o3 = jax.block_until_ready(doconv2d_eval_forward(x3, W3, th=8))
    np.testing.assert_allclose(np.asarray(o3), np.asarray(_reference(x3, W3)),
                               rtol=1e-4, atol=1e-4)

    print("KERNEL_OK")
</pallas_src>

<mosaic_0001>
module attributes {stable_mosaic.version = 11 : i64} {
  func.func @_doconv_fused_kernel(%arg0: i32, %arg1: i32, %arg2: i32, %arg3: memref<1x1x18x18x4xf32, #tpu.memory_space<vmem>>, %arg4: memref<36x128xf32, #tpu.memory_space<vmem>>, %arg5: memref<1x1x256x128xf32, #tpu.memory_space<vmem>>) attributes {dimension_semantics = [#tpu.dimension_semantics<parallel>, #tpu.dimension_semantics<parallel>, #tpu.dimension_semantics<arbitrary>], iteration_bounds = array<i64: 2, 1, 1>, scalar_prefetch = 0 : i64, scratch_operands = 0 : i64, tpu.core_type = #tpu.core_type<tc>, window_params = [{transform_indices = @transform_0, window_bounds = array<i64: 1, 1, 18, 18, 4>}, {transform_indices = @transform_1, window_bounds = array<i64: 36, 128>}, {transform_indices = @transform_2, window_bounds = array<i64: 1, 1, 256, 128>}]} {
    %c0 = arith.constant 0 : index
    %c0_0 = arith.constant 0 : index
    %c0_1 = arith.constant 0 : index
    %c0_2 = arith.constant 0 : index
    %c0_3 = arith.constant 0 : index
    %0 = vector.load %arg3[%c0, %c0_0, %c0_1, %c0_2, %c0_3] : memref<1x1x18x18x4xf32, #tpu.memory_space<vmem>>, vector<1x1x18x16x4xf32>
    %1 = vector.shape_cast %0 : vector<1x1x18x16x4xf32> to vector<18x16x4xf32>
    %c0_4 = arith.constant 0 : index
    %c0_5 = arith.constant 0 : index
    %c0_6 = arith.constant 0 : index
    %c1 = arith.constant 1 : index
    %c0_7 = arith.constant 0 : index
    %2 = vector.load %arg3[%c0_4, %c0_5, %c0_6, %c1, %c0_7] : memref<1x1x18x18x4xf32, #tpu.memory_space<vmem>>, vector<1x1x18x16x4xf32>
    %3 = vector.shape_cast %2 : vector<1x1x18x16x4xf32> to vector<18x16x4xf32>
    %c0_8 = arith.constant 0 : index
    %c0_9 = arith.constant 0 : index
    %c0_10 = arith.constant 0 : index
    %c2 = arith.constant 2 : index
    %c0_11 = arith.constant 0 : index
    %4 = vector.load %arg3[%c0_8, %c0_9, %c0_10, %c2, %c0_11] : memref<1x1x18x18x4xf32, #tpu.memory_space<vmem>>, vector<1x1x18x16x4xf32>
    %5 = vector.shape_cast %4 : vector<1x1x18x16x4xf32> to vector<18x16x4xf32>
    %6 = vector.extract_strided_slice %1 {offsets = [0, 0, 0], sizes = [16, 16, 4], strides = [1, 1, 1]} : vector<18x16x4xf32> to vector<16x16x4xf32>
    %7 = vector.extract_strided_slice %3 {offsets = [0, 0, 0], sizes = [16, 16, 4], strides = [1, 1, 1]} : vector<18x16x4xf32> to vector<16x16x4xf32>
    %8 = vector.extract_strided_slice %5 {offsets = [0, 0, 0], sizes = [16, 16, 4], strides = [1, 1, 1]} : vector<18x16x4xf32> to vector<16x16x4xf32>
    %9 = vector.extract_strided_slice %1 {offsets = [1, 0, 0], sizes = [16, 16, 4], strides = [1, 1, 1]} : vector<18x16x4xf32> to vector<16x16x4xf32>
    %10 = vector.extract_strided_slice %3 {offsets = [1, 0, 0], sizes = [16, 16, 4], strides = [1, 1, 1]} : vector<18x16x4xf32> to vector<16x16x4xf32>
    %11 = vector.extract_strided_slice %5 {offsets = [1, 0, 0], sizes = [16, 16, 4], strides = [1, 1, 1]} : vector<18x16x4xf32> to vector<16x16x4xf32>
    %12 = vector.extract_strided_slice %1 {offsets = [2, 0, 0], sizes = [16, 16, 4], strides = [1, 1, 1]} : vector<18x16x4xf32> to vector<16x16x4xf32>
    %13 = vector.extract_strided_slice %3 {offsets = [2, 0, 0], sizes = [16, 16, 4], strides = [1, 1, 1]} : vector<18x16x4xf32> to vector<16x16x4xf32>
    %14 = vector.extract_strided_slice %5 {offsets = [2, 0, 0], sizes = [16, 16, 4], strides = [1, 1, 1]} : vector<18x16x4xf32> to vector<16x16x4xf32>
    %15 = tpu.concatenate %6, %7, %8, %9, %10, %11, %12, %13, %14 in 2 : vector<16x16x4xf32>, vector<16x16x4xf32>, vector<16x16x4xf32>, vector<16x16x4xf32>, vector<16x16x4xf32>, vector<16x16x4xf32>, vector<16x16x4xf32>, vector<16x16x4xf32>, vector<16x16x4xf32> -> vector<16x16x36xf32>
    %16 = vector.shape_cast %15 : vector<16x16x36xf32> to vector<256x36xf32>
    %c0_12 = arith.constant 0 : index
    %c0_13 = arith.constant 0 : index
    %17 = vector.load %arg4[%c0_12, %c0_13] : memref<36x128xf32, #tpu.memory_space<vmem>>, vector<36x128xf32>
    %cst = arith.constant dense<0.000000e+00> : vector<256x128xf32>
    %18 = tpu.matmul %16, %17, %cst {dimension_numbers = #tpu.dot_dimension_numbers<[1], [0], [0], [1], [0, 0, 1, 1], [], []>} : vector<256x36xf32>, vector<36x128xf32>, vector<256x128xf32> -> vector<256x128xf32>
    %c0_14 = arith.constant 0 : index
    %c0_15 = arith.constant 0 : index
    %c0_16 = arith.constant 0 : index
    %c0_17 = arith.constant 0 : index
    %19 = vector.load %arg5[%c0_14, %c0_15, %c0_16, %c0_17] : memref<1x1x256x128xf32, #tpu.memory_space<vmem>>, vector<1x1x256x128xf32>
    %20 = vector.shape_cast %19 : vector<1x1x256x128xf32> to vector<256x128xf32>
    %21 = vector.shape_cast %18 : vector<256x128xf32> to vector<1x1x256x128xf32>
    tpu.vector_store %arg5[%c0_14, %c0_15, %c0_16, %c0_17], %21 {strides = array<i32>} : memref<1x1x256x128xf32, #tpu.memory_space<vmem>>, vector<1x1x256x128xf32>,
    return
  }
  func.func @transform_0(%arg0: i32, %arg1: i32, %arg2: i32) -> (i32, i32, i32, i32, i32) {
    %c0_i32 = arith.constant 0 : i32
    %c0_i32_0 = arith.constant 0 : i32
    %c0_i32_1 = arith.constant 0 : i32
    %c0_i32_2 = arith.constant 0 : i32
    return %arg0, %arg1, %c0_i32, %c0_i32_0, %c0_i32_1 : i32, i32, i32, i32, i32
  }
  func.func @transform_1(%arg0: i32, %arg1: i32, %arg2: i32) -> (i32, i32) {
    %c0_i32 = arith.constant 0 : i32
    %c0_i32_0 = arith.constant 0 : i32
    return %c0_i32, %arg2 : i32, i32
  }
  func.func @transform_2(%arg0: i32, %arg1: i32, %arg2: i32) -> (i32, i32, i32, i32) {
    %c0_i32 = arith.constant 0 : i32
    %c0_i32_0 = arith.constant 0 : i32
    return %arg0, %arg1, %c0_i32, %arg2 : i32, i32, i32, i32
  }
}

</mosaic_0001>

<bundles_post_ra>
// kernel: tpu_custom_call.1
= control target key start
LH: loop header
LB: loop body
LE: loop exit
PB: predicated region body
PF: predicated region fallthrough
CT: control target
= control target key end

     0   :  { %7 = vsyncpa [#allocation3], 0  ;;  %s3892_s0 = inlined_call_operand.vmem [shape: f32[2,1,18,18,4], index: 0, kind: input, shape index: {}]   ;;  %s3893_s1 = inlined_call_operand.vmem [shape: f32[36,128], index: 1, kind: input, shape index: {}]   ;;  %s3894_s2 = inlined_call_operand.hbm [shape: f32[2,1,256,128], index: 2, kind: output, shape index: {}]  }
   0x1   :  { %9 = vsyncpa [#allocation3 + $0x1], 0  ;;  %s2087_s9 = smov 0   ;;  %s2089_s10 = smov 0  }
   0x2   :  { %s2091_s11 = smov 0   ;;  %s2093_s12 = smov 0  }
   0x3   :  { %s2095_s13 = smov 0   ;;  %s2097_s14 = smov 0  }
   0x4 LB: > { %s1813_s15 = sadd.s32 4294967295, %s2061_s14   ;;  %s1814_s16 = sadd.s32 4294967294, %s2061_s14   ;;  %s2061_s14 = sphi %s2097_s14, %s15_s14   ;;  %s2057_s13 = sphi %s2095_s13, %s4266_s13   ;;  %s2053_s12 = sphi %s2093_s12, %s4265_s12   ;;  %s2049_s11 = sphi %s2091_s11, %s4264_s11   ;;  %s2045_s10 = sphi %s2089_s10, %s4263_s10   ;;  %s2041_s9 = sphi %s2087_s9, %s4262_s9  }
   0x5   : > { %s34_s17 = sadd.s32 1, %s2057_s13  ;;  %s99_s18 = sadd.s32 1, %s2049_s11 }
   0x6   : > { %p36_p0 = scmp.ge.s32.totalorder %s34_s17, 2  ;;  %p109_p1 = scmp.ne.s32.totalorder %s2049_s11, %s2045_s10 }
   0x7   : > { %p110_p2 = scmp.eq.s32.totalorder %s1813_s15, 1  ;;  %p115_p3 = scmp.ne.s32.totalorder %s2045_s10, %s2041_s9 }
   0x8   : > { %s4268_s17 = smov (%p36_p0, %s34_s17), 0  ;;  %p116_p5 = scmp.eq.s32.totalorder %s1814_s16, 1 }
   0x9   : > { %p2127_p4 = por %p110_p2, %p109_p1  ;;  %s92_s20 = ssub.s32 %s2057_s13, %s4268_s17 }
   0xa   : > { %p1818_p6 = scmp.ge.s32.totalorder %s2061_s14, 1  ;;  %p97_p7 = scmp.eq.s32.totalorder %s92_s20, 0 }
   0xb   : > { %p2134_p8 = por %p116_p5, %p115_p3  ;;  %p153_p9 = scmp.lt.s32.totalorder %s2061_s14, 3 }
   0xc   : > { %s2140_s22 = scalar_select %p97_p7, %s2049_s11, %s99_s18  }
   0xd   : > { %p154_p10 = pnand %p1818_p6, %p153_p9 }
   0xf   : > { %157 = sbr.rel (%p154_p10) target bundleno = 955 (0x3bb), region = 28 }
  0x14   : > { %p183_p11 = scmp.lt.s32.totalorder %s2053_s12, 1  ;;  %s2063_s28 = smov 4   ;;  %vm1178_vm0 = vcmask 31744   ;;  %vm1211_vm1 = vcmask 64512   ;;  %vm1244_vm2 = vcmask 97280   ;;  %vm1277_vm3 = vcmask 130048  }
  0x15   : > { %s2064_s29 = smov 8   ;;  %s2065_s30 = smov 12   ;;  %vm1310_vm4 = vcmask 162816   ;;  %vm1343_vm5 = vcmask 195584   ;;  %vm1544_vm6 = vcmask 1043456   ;;  %vm1376_vm7 = vcmask 228352  }
  0x16   : > { %s184_s23 = scalar_select %p183_p11, %s2053_s12, 1  ;;  %vm1409_vm8 = vcmask 261120   ;;  %vm1447_vm9 = vcmask 293888  }
  0x17   : > { %s2066_s3 = smov 16   ;;  %s2067_s4 = smov 20  }
  0x18   : > { %s1875_s24 = smul.u32 432, %s184_s23  ;;  %s2068_s5 = smov 24  }
  0x19   : > { %s2069_s6 = smov 32   ;;  %s2070_s7 = smov 28  }
  0x1a   : > { %s2147_s27 = scalar_lea.vmem %s3892_s0, %s1875_s24  ;;  %s2003_s24 = scalar_lea.hbm %s3894_s2, 512 }
  0x1b   : > { %v2150_v0 = vld [vmem:[%s2147_s27 + $0x31] sm:$0xff]  ;;  %v2153_v1 = vld [vmem:[%s2147_s27 + $0x19] sm:$0xff]  ;;  %v232_v2 = vld [vmem:[%s2147_s27 + $0x1] sm:$0xff] }
  0x1c   : > { %344 = vrot.lane.b32.xlu2 %v2150_v0, %s2063_s28  ;;  %340 = vrot.lane.b32.xlu1 %v2153_v1, %s2063_s28  ;;  %v2162_v3 = vld [vmem:[%s2147_s27 + $0x39] sm:$0xff]  ;;  %v2165_v4 = vld [vmem:[%s2147_s27 + $0x21] sm:$0xff] }
  0x1d   : > { %336 = vrot.lane.b32.xlu0 %v232_v2, %s2063_s28  ;;  %v233_v5 = vld [vmem:[%s2147_s27 + $0x9] sm:$0xff]  ;;  %v2174_v6 = vld [vmem:[%s2147_s27 + $0x61] sm:$0xff]  ;;  %v2177_v7 = vld [vmem:[%s2147_s27 + $0x51] sm:$0xff] }
  0x1e   : > { %v2180_v8 = vld [vmem:[%s2147_s27 + $0x49] sm:$0xff]  ;;  %v2189_v9 = vld [vmem:[%s2147_s27 + $0x81] sm:$0xff]  ;;  %v2192_v10 = vld [vmem:[%s2147_s27 + $0x79] sm:$0xff] }
  0x1f   : > { %v2195_v11 = vld [vmem:[%s2147_s27 + $0x69] sm:$0xff]  ;;  %v2207_v13 = vld [vmem:[%s2147_s27 + $0x99] sm:$0xff]  ;;  %v2210_v14 = vld [vmem:[%s2147_s27 + $0x91] sm:$0xff] }
  0x20   : > { %v2204_v12 = vld [vmem:[%s2147_s27 + $0xa9] sm:$0xff]  ;;  %v2222_v16 = vld [vmem:[%s2147_s27 + $0xc1] sm:$0xff]  ;;  %v2225_v17 = vld [vmem:[%s2147_s27 + $0xb1] sm:$0xff] }
  0x21   : > { %v2219_v15 = vld [vmem:[%s2147_s27 + $0xc9] sm:$0xff]  ;;  %v2234_v18 = vld [vmem:[%s2147_s27 + $0xf1] sm:$0xff]  ;;  %v2237_v19 = vld [vmem:[%s2147_s27 + $0xe1] sm:$0xff] }
  0x22   : > { %v2240_v20 = vld [vmem:[%s2147_s27 + $0xd9] sm:$0xff]  ;;  %v2249_v21 = vld [vmem:[%s2147_s27 + $0x111] sm:$0xff]  ;;  %v2252_v22 = vld [vmem:[%s2147_s27 + $0x109] sm:$0xff] }
  0x23   : > { %v2255_v23 = vld [vmem:[%s2147_s27 + $0xf9] sm:$0xff]  ;;  %v2267_v25 = vld [vmem:[%s2147_s27 + $0x129] sm:$0xff]  ;;  %v2270_v26 = vld [vmem:[%s2147_s27 + $0x121] sm:$0xff] }
  0x24   : > { %346 = vrot.lane.b32.xlu2 %v2162_v3, %s2063_s28  ;;  %342 = vrot.lane.b32.xlu1 %v2165_v4, %s2063_s28  ;;  %v2264_v24 = vld [vmem:[%s2147_s27 + $0x139] sm:$0xff]  ;;  %v2282_v28 = vld [vmem:[%s2147_s27 + $0x151] sm:$0xff] }
  0x25   : > { %338 = vrot.lane.b32.xlu0 %v233_v5, %s2063_s28  ;;  %v2279_v27 = vld [vmem:[%s2147_s27 + $0x159] sm:$0xff]  ;;  %v2285_v29 = vld [vmem:[%s2147_s27 + $0x141] sm:$0xff]  ;;  %v2295_v31 = vld [vmem:[%s2147_s27 + $0x171] sm:$0xff] }
  0x26   : > { %v268_v30 = vld [vmem:[%s2147_s27 + $0x2] sm:$0xff]  ;;  %v2309_v34 = vld [vmem:[%s2147_s27 + $0x1a] sm:$0xff]  ;;  %v269_v35 = vld [vmem:[%s2147_s27 + $0xa] sm:$0xff] }
  0x27   : > { %v2298_v32 = vld [vmem:[%s2147_s27 + $0x169] sm:$0xff]  ;;  %v2323_v38 = vld [vmem:[%s2147_s27 + $0x3a] sm:$0xff]  ;;  %v2326_v39 = vld [vmem:[%s2147_s27 + $0x32] sm:$0xff] }
  0x28   : > { %v2306_v33 = vld [vmem:[%s2147_s27 + $0x22] sm:$0xff]  ;;  %v2320_v37 = vld [vmem:[%s2147_s27 + $0x4a] sm:$0xff]  ;;  %3967 = vst [vmem:[#allocation6_spill] sm:$0xff] %v2323_v38  ;;  %v2343_v43 = vld [vmem:[%s2147_s27 + $0x52] sm:$0xff] }
  0x29   : > { %v2337_v41 = vld [vmem:[%s2147_s27 + $0x6a] sm:$0xff]  ;;  %v2340_v42 = vld [vmem:[%s2147_s27 + $0x62] sm:$0xff]  ;;  %v2354_v45 = vld [vmem:[%s2147_s27 + $0x92] sm:$0xff] }
  0x2a   : > { %v2357_v46 = vld [vmem:[%s2147_s27 + $0x82] sm:$0xff]  ;;  %v2360_v47 = vld [vmem:[%s2147_s27 + $0x7a] sm:$0xff]  ;;  %v2375_v51 = vld [vmem:[%s2147_s27 + $0xb2] sm:$0xff] }
  0x2b   : > { %v2378_v52 = vld [vmem:[%s2147_s27 + $0xaa] sm:$0xff]  ;;  %v2381_v53 = vld [vmem:[%s2147_s27 + $0x9a] sm:$0xff]  ;;  %v2402_v59 = vld [vmem:[%s2147_s27 + $0xc2] sm:$0xff] }
  0x2c   : > { %352 = vrot.lane.b32.xlu2 %v2174_v6, %s2063_s28  ;;  %350 = vrot.lane.b32.xlu1 %v2177_v7, %s2063_s28  ;;  %3973 = vst [vmem:[#allocation12_spill] sm:$0xff] %v2381_v53  ;;  %v2396_v57 = vld [vmem:[%s2147_s27 + $0xda] sm:$0xff]  ;;  %v2399_v58 = vld [vmem:[%s2147_s27 + $0xca] sm:$0xff] }
  0x2d   : > { %348 = vrot.lane.b32.xlu0 %v2180_v8, %s2063_s28  ;;  %v2417_v63 = vld [vmem:[%s2147_s27 + $0xfa] sm:$0xff]  ;;  %v2420_v2 = vld [vmem:[%s2147_s27 + $0xf2] sm:$0xff]  ;;  %v2423_v5 = vld [vmem:[%s2147_s27 + $0xe2] sm:$0xff] }
  0x34   : > { %358 = vrot.lane.b32.xlu2 %v2189_v9, %s2063_s28  ;;  %356 = vrot.lane.b32.xlu1 %v2192_v10, %s2063_s28 }
  0x35   : > { %354 = vrot.lane.b32.xlu0 %v2195_v11, %s2063_s28 }
  0x3c   : > { %364 = vrot.lane.b32.xlu2 %v2204_v12, %s2063_s28  ;;  %362 = vrot.lane.b32.xlu1 %v2207_v13, %s2063_s28 }
  0x3d   : > { %360 = vrot.lane.b32.xlu0 %v2210_v14, %s2063_s28 }
  0x44   : > { %370 = vrot.lane.b32.xlu2 %v2219_v15, %s2063_s28  ;;  %368 = vrot.lane.b32.xlu1 %v2222_v16, %s2063_s28 }
  0x45   : > { %366 = vrot.lane.b32.xlu0 %v2225_v17, %s2063_s28 }
  0x4c   : > { %376 = vrot.lane.b32.xlu2 %v2234_v18, %s2063_s28  ;;  %374 = vrot.lane.b32.xlu1 %v2237_v19, %s2063_s28 }
  0x4d   : > { %372 = vrot.lane.b32.xlu0 %v2240_v20, %s2063_s28 }
  0x54   : > { %382 = vrot.lane.b32.xlu2 %v2249_v21, %s2063_s28  ;;  %380 = vrot.lane.b32.xlu1 %v2252_v22, %s2063_s28 }
  0x55   : > { %378 = vrot.lane.b32.xlu0 %v2255_v23, %s2063_s28 }
  0x5c   : > { %388 = vrot.lane.b32.xlu2 %v2264_v24, %s2063_s28  ;;  %386 = vrot.lane.b32.xlu1 %v2267_v25, %s2063_s28 }
  0x5d   : > { %384 = vrot.lane.b32.xlu0 %v2270_v26, %s2063_s28 }
  0x64   : > { %394 = vrot.lane.b32.xlu2 %v2279_v27, %s2063_s28  ;;  %392 = vrot.lane.b32.xlu1 %v2282_v28, %s2063_s28 }
  0x65   : > { %390 = vrot.lane.b32.xlu0 %v2285_v29, %s2063_s28 }
  0x6c   : > { %464 = vrot.lane.b32.xlu2 %v268_v30, %s2064_s29  ;;  %398 = vrot.lane.b32.xlu1 %v2295_v31, %s2063_s28 }
  0x6d   : > { %396 = vrot.lane.b32.xlu0 %v2298_v32, %s2063_s28 }
  0x74   : > { %470 = vrot.lane.b32.xlu2 %v2306_v33, %s2064_s29  ;;  %468 = vrot.lane.b32.xlu1 %v2309_v34, %s2064_s29 }
  0x75   : > { %466 = vrot.lane.b32.xlu0 %v269_v35, %s2064_s29 }
  0x76   : > { %v2317_v36 = vpop.permute.xlu2 %344 }
  0x77   : > { %3966 = vst [vmem:[#allocation5_spill] sm:$0xff] %v2317_v36  ;;  %v2462_v36 = vld [vmem:[%s2147_s27 + $0x13a] sm:$0xff] }
  0x7c   : > { %476 = vrot.lane.b32.xlu2 %v2320_v37, %s2064_s29  ;;  %474 = vrot.lane.b32.xlu1 %v2323_v38, %s2064_s29 }
  0x7d   : > { %472 = vrot.lane.b32.xlu0 %v2326_v39, %s2064_s29 }
  0x7e   : > { %v2334_v40 = vpop.permute.xlu2 %346 }
  0x7f   : > { %3968 = vst [vmem:[#allocation7_spill] sm:$0xff] %v2334_v40  ;;  %v2441_v40 = vld [vmem:[%s2147_s27 + $0x112] sm:$0xff] }
  0x84   : > { %482 = vrot.lane.b32.xlu2 %v2337_v41, %s2064_s29  ;;  %480 = vrot.lane.b32.xlu1 %v2340_v42, %s2064_s29 }
  0x85   : > { %478 = vrot.lane.b32.xlu0 %v2343_v43, %s2064_s29 }
  0x86   : > { %v2351_v44 = vpop.permute.xlu2 %352 }
  0x87   : > { %3969 = vst [vmem:[#allocation8_spill] sm:$0xff] %v2351_v44 }
  0x8c   : > { %488 = vrot.lane.b32.xlu2 %v2354_v45, %s2064_s29  ;;  %486 = vrot.lane.b32.xlu1 %v2357_v46, %s2064_s29 }
  0x8d   : > { %484 = vrot.lane.b32.xlu0 %v2360_v47, %s2064_s29 }
  0x8e   : > { %v2368_v48 = vpop.permute.xlu2 %358  ;;  %v2370_v49 = vpop.permute.xlu1 %340 }
  0x8f   : > { %3970 = vst [vmem:[#allocation9_spill] sm:$0xff] %v2368_v48  ;;  %v2372_v50 = vpop.permute.xlu0 %336  ;;  %v2438_v48 = vld [vmem:[%s2147_s27 + $0x122] sm:$0xff] }
  0x90   : > { %3971 = vst [vmem:[#allocation10_spill] sm:$0xff] %v2370_v49  ;;  %v2501_v49 = vld [vmem:[%s2147_s27 + $0x172] sm:$0xff] }
  0x91   : > { %3972 = vst [vmem:[#allocation11_spill] sm:$0xff] %v2372_v50 }
  0x92   : > { %3997 = vst [vmem:[#allocation36_spill] sm:$0xff] %v2501_v49 }
  0x94   : > { %494 = vrot.lane.b32.xlu2 %v2375_v51, %s2064_s29  ;;  %492 = vrot.lane.b32.xlu1 %v2378_v52, %s2064_s29 }
  0x95   : > { %490 = vrot.lane.b32.xlu0 %v2381_v53, %s2064_s29 }
  0x96   : > { %v2389_v54 = vpop.permute.xlu2 %364  ;;  %v2391_v55 = vpop.permute.xlu1 %342 }
  0x97   : > { %3974 = vst [vmem:[#allocation13_spill] sm:$0xff] %v2389_v54  ;;  %v2393_v56 = vpop.permute.xlu0 %338  ;;  %v2486_v54 = vld [vmem:[%s2147_s27 + $0x152] sm:$0xff] }
  0x98   : > { %3975 = vst [vmem:[#allocation14_spill] sm:$0xff] %v2391_v55  ;;  %v2504_v55 = vld [vmem:[%s2147_s27 + $0x18] sm:$0xff] }
  0x99   : > { %3976 = vst [vmem:[#allocation15_spill] sm:$0xff] %v2393_v56  ;;  %v2465_v56 = vld [vmem:[%s2147_s27 + $0x12a] sm:$0xff] }
  0x9a   : > { %3993 = vst [vmem:[#allocation32_spill] sm:$0xff] %v2486_v54 }
  0x9b   : > { %3998 = vst [vmem:[#allocation37_spill] sm:$0xff] %v2504_v55 }
  0x9c   : > { %500 = vrot.lane.b32.xlu2 %v2396_v57, %s2064_s29  ;;  %498 = vrot.lane.b32.xlu1 %v2399_v58, %s2064_s29 }
  0x9d   : > { %496 = vrot.lane.b32.xlu0 %v2402_v59, %s2064_s29 }
  0x9e   : > { %v2410_v60 = vpop.permute.xlu2 %370  ;;  %v2412_v61 = vpop.permute.xlu1 %350 }
  0x9f   : > { %3977 = vst [vmem:[#allocation16_spill] sm:$0xff] %v2410_v60  ;;  %v2414_v62 = vpop.permute.xlu0 %348  ;;  %v2480_v60 = vld [vmem:[%s2147_s27 + $0x16a] sm:$0xff] }
  0xa0   : > { %3978 = vst [vmem:[#allocation17_spill] sm:$0xff] %v2412_v61  ;;  %v2459_v61 = vld [vmem:[%s2147_s27 + $0x142] sm:$0xff] }
  0xa1   : > { %3979 = vst [vmem:[#allocation18_spill] sm:$0xff] %v2414_v62  ;;  %v2444_v62 = vld [vmem:[%s2147_s27 + $0x10a] sm:$0xff] }
  0xa2   : > { %3983 = vst [vmem:[#allocation22_spill] sm:$0xff] %v2444_v62 }
  0xa3   : > { %3987 = vst [vmem:[#allocation26_spill] sm:$0xff] %v2459_v61 }
  0xa4   : > { %506 = vrot.lane.b32.xlu2 %v2417_v63, %s2064_s29  ;;  %504 = vrot.lane.b32.xlu1 %v2420_v2, %s2064_s29  ;;  %3991 = vst [vmem:[#allocation30_spill] sm:$0xff] %v2480_v60 }
  0xa5   : > { %502 = vrot.lane.b32.xlu0 %v2423_v5, %s2064_s29 }
  0xa6   : > { %v2431_v30 = vpop.permute.xlu2 %376  ;;  %v2433_v35 = vpop.permute.xlu1 %356 }
  0xa7   : > { %3980 = vst [vmem:[#allocation19_spill] sm:$0xff] %v2431_v30  ;;  %v2435_v44 = vpop.permute.xlu0 %354 }
  0xa8   : > { %3981 = vst [vmem:[#allocation20_spill] sm:$0xff] %v2433_v35 }
  0xa9   : > { %3982 = vst [vmem:[#allocation21_spill] sm:$0xff] %v2435_v44 }
  0xac   : > { %512 = vrot.lane.b32.xlu2 %v2438_v48, %s2064_s29  ;;  %510 = vrot.lane.b32.xlu1 %v2441_v40, %s2064_s29 }
  0xad   : > { %508 = vrot.lane.b32.xlu0 %v2444_v62, %s2064_s29 }
  0xae   : > { %v2452_v35 = vpop.permute.xlu2 %382  ;;  %v2454_v44 = vpop.permute.xlu1 %362 }
  0xaf   : > { %3984 = vst [vmem:[#allocation23_spill] sm:$0xff] %v2452_v35  ;;  %v2456_v50 = vpop.permute.xlu0 %360 }
  0xb0   : > { %3985 = vst [vmem:[#allocation24_spill] sm:$0xff] %v2454_v44  ;;  %v2483_v44 = vld [vmem:[%s2147_s27 + $0x15a] sm:$0xff] }
  0xb1   : > { %3986 = vst [vmem:[#allocation25_spill] sm:$0xff] %v2456_v50 }
  0xb2   : > { %3992 = vst [vmem:[#allocation31_spill] sm:$0xff] %v2483_v44 }
  0xb4   : > { %518 = vrot.lane.b32.xlu2 %v2459_v61, %s2064_s29  ;;  %516 = vrot.lane.b32.xlu1 %v2462_v36, %s2064_s29  ;;  %v2522_v61 = vld [vmem:[%s2147_s27 + $0x38] sm:$0xff] }
  0xb5   : > { %514 = vrot.lane.b32.xlu0 %v2465_v56, %s2064_s29  ;;  %4003 = vst [vmem:[#allocation42_spill] sm:$0xff] %v2522_v61 }
  0xb6   : > { %v2473_v35 = vpop.permute.xlu2 %388  ;;  %v2475_v50 = vpop.permute.xlu1 %368 }
  0xb7   : > { %3988 = vst [vmem:[#allocation27_spill] sm:$0xff] %v2473_v35  ;;  %v2477_v30 = vpop.permute.xlu0 %366 }
  0xb8   : > { %3989 = vst [vmem:[#allocation28_spill] sm:$0xff] %v2475_v50 }
  0xb9   : > { %3990 = vst [vmem:[#allocation29_spill] sm:$0xff] %v2477_v30 }
  0xbc   : > { %524 = vrot.lane.b32.xlu2 %v2480_v60, %s2064_s29  ;;  %522 = vrot.lane.b32.xlu1 %v2483_v44, %s2064_s29  ;;  %v2507_v60 = vld [vmem:[%s2147_s27 + $0x20] sm:$0xff]  ;;  %v2528_v44 = vld [vmem:[%s2147_s27 + $0x30] sm:$0xff] }
  0xbd   : > { %520 = vrot.lane.b32.xlu0 %v2486_v54, %s2064_s29  ;;  %3999 = vst [vmem:[#allocation38_spill] sm:$0xff] %v2507_v60  ;;  %v2525_v54 = vld [vmem:[%s2147_s27 + $0x48] sm:$0xff] }
  0xbe   : > { %v2494_v35 = vpop.permute.xlu2 %394  ;;  %v2496_v50 = vpop.permute.xlu1 %374  ;;  %4004 = vst [vmem:[#allocation43_spill] sm:$0xff] %v2525_v54 }
  0xbf   : > { %3994 = vst [vmem:[#allocation33_spill] sm:$0xff] %v2494_v35  ;;  %v2498_v30 = vpop.permute.xlu0 %372 }
  0xc0   : > { %3995 = vst [vmem:[#allocation34_spill] sm:$0xff] %v2496_v50 }
  0xc1   : > { %3996 = vst [vmem:[#allocation35_spill] sm:$0xff] %v2498_v30 }
  0xc2   : > { %4005 = vst [vmem:[#allocation44_spill] sm:$0xff] %v2528_v44 }
  0xc4   : > { %594 = vrot.lane.b32.xlu2 %v2507_v60, %s2065_s30  ;;  %592 = vrot.lane.b32.xlu1 %v2504_v55, %s2065_s30  ;;  %v2543_v55 = vld [vmem:[%s2147_s27 + $0x60] sm:$0xff]  ;;  %v2546_v60 = vld [vmem:[%s2147_s27 + $0x68] sm:$0xff] }
  0xc5   : > { %526 = vrot.lane.b32.xlu0 %v2501_v49, %s2064_s29  ;;  %4009 = vst [vmem:[#allocation48_spill] sm:$0xff] %v2543_v55  ;;  %v2549_v49 = vld [vmem:[%s2147_s27 + $0x50] sm:$0xff] }
  0xc6   : > { %v2515_v35 = vpop.permute.xlu2 %464  ;;  %v2517_v50 = vpop.permute.xlu1 %380  ;;  %4010 = vst [vmem:[#allocation49_spill] sm:$0xff] %v2546_v60 }
  0xc7   : > { %4000 = vst [vmem:[#allocation39_spill] sm:$0xff] %v2515_v35  ;;  %v2519_v30 = vpop.permute.xlu0 %378 }
  0xc8   : > { %4001 = vst [vmem:[#allocation40_spill] sm:$0xff] %v2517_v50 }
  0xc9   : > { %4002 = vst [vmem:[#allocation41_spill] sm:$0xff] %v2519_v30 }
  0xca   : > { %4011 = vst [vmem:[#allocation50_spill] sm:$0xff] %v2549_v49 }
  0xcc   : > { %600 = vrot.lane.b32.xlu2 %v2525_v54, %s2065_s30  ;;  %598 = vrot.lane.b32.xlu1 %v2522_v61, %s2065_s30  ;;  %v2570_v61 = vld [vmem:[%s2147_s27 + $0x78] sm:$0xff] }
  0xcd   : > { %596 = vrot.lane.b32.xlu0 %v2528_v44, %s2065_s30  ;;  %v2567_v44 = vld [vmem:[%s2147_s27 + $0x90] sm:$0xff]  ;;  %4017 = vst [vmem:[#allocation56_spill] sm:$0xff] %v2570_v61 }
  0xce   : > { %v2536_v35 = vpop.permute.xlu2 %470  ;;  %v2538_v50 = vpop.permute.xlu1 %386  ;;  %4016 = vst [vmem:[#allocation55_spill] sm:$0xff] %v2567_v44 }
  0xcf   : > { %4006 = vst [vmem:[#allocation45_spill] sm:$0xff] %v2536_v35  ;;  %v2540_v30 = vpop.permute.xlu0 %384  ;;  %v2564_v35 = vld [vmem:[%s2147_s27 + $0x80] sm:$0xff] }
  0xd0   : > { %4007 = vst [vmem:[#allocation46_spill] sm:$0xff] %v2538_v50 }
  0xd1   : > { %4008 = vst [vmem:[#allocation47_spill] sm:$0xff] %v2540_v30 }
  0xd2   : > { %4015 = vst [vmem:[#allocation54_spill] sm:$0xff] %v2564_v35 }
  0xd4   : > { %606 = vrot.lane.b32.xlu2 %v2546_v60, %s2065_s30  ;;  %604 = vrot.lane.b32.xlu1 %v2543_v55, %s2065_s30  ;;  %v2585_v60 = vld [vmem:[%s2147_s27 + $0xa8] sm:$0xff]  ;;  %v2591_v55 = vld [vmem:[%s2147_s27 + $0x98] sm:$0xff] }
  0xd5   : > { %602 = vrot.lane.b32.xlu0 %v2549_v49, %s2065_s30  ;;  %4021 = vst [vmem:[#allocation60_spill] sm:$0xff] %v2585_v60  ;;  %v2588_v49 = vld [vmem:[%s2147_s27 + $0xb0] sm:$0xff] }
  0xd6   : > { %v2557_v50 = vpop.permute.xlu2 %476  ;;  %v2559_v30 = vpop.permute.xlu1 %392  ;;  %4022 = vst [vmem:[#allocation61_spill] sm:$0xff] %v2588_v49 }
  0xd7   : > { %4012 = vst [vmem:[#allocation51_spill] sm:$0xff] %v2557_v50  ;;  %v2561_v54 = vpop.permute.xlu0 %390 }
  0xd8   : > { %4013 = vst [vmem:[#allocation52_spill] sm:$0xff] %v2559_v30 }
  0xd9   : > { %4014 = vst [vmem:[#allocation53_spill] sm:$0xff] %v2561_v54 }
  0xda   : > { %4023 = vst [vmem:[#allocation62_spill] sm:$0xff] %v2591_v55 }
  0xdc   : > { %612 = vrot.lane.b32.xlu2 %v2567_v44, %s2065_s30  ;;  %610 = vrot.lane.b32.xlu1 %v2564_v35, %s2065_s30  ;;  %v2606_v44 = vld [vmem:[%s2147_s27 + $0xc8] sm:$0xff]  ;;  %v2612_v35 = vld [vmem:[%s2147_s27 + $0xc0] sm:$0xff] }
  0xdd   : > { %608 = vrot.lane.b32.xlu0 %v2570_v61, %s2065_s30  ;;  %4027 = vst [vmem:[#allocation66_spill] sm:$0xff] %v2606_v44  ;;  %v2609_v61 = vld [vmem:[%s2147_s27 + $0xd8] sm:$0xff] }
  0xde   : > { %v2578_v50 = vpop.permute.xlu2 %482  ;;  %v2580_v30 = vpop.permute.xlu1 %398  ;;  %4028 = vst [vmem:[#allocation67_spill] sm:$0xff] %v2609_v61 }
  0xdf   : > { %4018 = vst [vmem:[#allocation57_spill] sm:$0xff] %v2578_v50  ;;  %v2582_v54 = vpop.permute.xlu0 %396 }
  0xe0   : > { %4019 = vst [vmem:[#allocation58_spill] sm:$0xff] %v2580_v30 }
  0xe1   : > { %4020 = vst [vmem:[#allocation59_spill] sm:$0xff] %v2582_v54 }
  0xe2   : > { %4029 = vst [vmem:[#allocation68_spill] sm:$0xff] %v2612_v35 }
  0xe4   : > { %618 = vrot.lane.b32.xlu2 %v2588_v49, %s2065_s30  ;;  %616 = vrot.lane.b32.xlu1 %v2585_v60, %s2065_s30  ;;  %v2633_v60 = vld [vmem:[%s2147_s27 + $0xe0] sm:$0xff] }
  0xe5   : > { %614 = vrot.lane.b32.xlu0 %v2591_v55, %s2065_s30  ;;  %v2630_v55 = vld [vmem:[%s2147_s27 + $0xf8] sm:$0xff]  ;;  %4035 = vst [vmem:[#allocation74_spill] sm:$0xff] %v2633_v60 }
  0xe6   : > { %v2599_v50 = vpop.permute.xlu2 %488  ;;  %v2601_v30 = vpop.permute.xlu1 %468  ;;  %4034 = vst [vmem:[#allocation73_spill] sm:$0xff] %v2630_v55 }
  0xe7   : > { %4024 = vst [vmem:[#allocation63_spill] sm:$0xff] %v2599_v50  ;;  %v2603_v54 = vpop.permute.xlu0 %466 }
  0xe8   : > { %4025 = vst [vmem:[#allocation64_spill] sm:$0xff] %v2601_v30  ;;  %v2627_v30 = vld [vmem:[%s2147_s27 + $0xf0] sm:$0xff] }
  0xe9   : > { %4026 = vst [vmem:[#allocation65_spill] sm:$0xff] %v2603_v54 }
  0xea   : > { %4033 = vst [vmem:[#allocation72_spill] sm:$0xff] %v2627_v30 }
  0xec   : > { %624 = vrot.lane.b32.xlu2 %v2609_v61, %s2065_s30  ;;  %622 = vrot.lane.b32.xlu1 %v2606_v44, %s2065_s30  ;;  %v2654_v44 = vld [vmem:[%s2147_s27 + $0x108] sm:$0xff] }
  0xed   : > { %620 = vrot.lane.b32.xlu0 %v2612_v35, %s2065_s30  ;;  %v2651_v35 = vld [vmem:[%s2147_s27 + $0x120] sm:$0xff]  ;;  %4041 = vst [vmem:[#allocation80_spill] sm:$0xff] %v2654_v44 }
  0xee   : > { %v2620_v50 = vpop.permute.xlu2 %494  ;;  %v2622_v54 = vpop.permute.xlu1 %474  ;;  %4040 = vst [vmem:[#allocation79_spill] sm:$0xff] %v2651_v35 }
  0xef   : > { %4030 = vst [vmem:[#allocation69_spill] sm:$0xff] %v2620_v50  ;;  %v2624_v49 = vpop.permute.xlu0 %472  ;;  %v2648_v50 = vld [vmem:[%s2147_s27 + $0x110] sm:$0xff] }
  0xf0   : > { %4031 = vst [vmem:[#allocation70_spill] sm:$0xff] %v2622_v54 }
  0xf1   : > { %4032 = vst [vmem:[#allocation71_spill] sm:$0xff] %v2624_v49 }
  0xf2   : > { %4039 = vst [vmem:[#allocation78_spill] sm:$0xff] %v2648_v50 }
  0xf4   : > { %630 = vrot.lane.b32.xlu2 %v2630_v55, %s2065_s30  ;;  %628 = vrot.lane.b32.xlu1 %v2627_v30, %s2065_s30  ;;  %v2675_v30 = vld [vmem:[%s2147_s27 + $0x128] sm:$0xff] }
  0xf5   : > { %626 = vrot.lane.b32.xlu0 %v2633_v60, %s2065_s30  ;;  %v2672_v60 = vld [vmem:[%s2147_s27 + $0x140] sm:$0xff]  ;;  %4047 = vst [vmem:[#allocation86_spill] sm:$0xff] %v2675_v30 }
  0xf6   : > { %v2641_v54 = vpop.permute.xlu2 %500  ;;  %v2643_v49 = vpop.permute.xlu1 %480  ;;  %4046 = vst [vmem:[#allocation85_spill] sm:$0xff] %v2672_v60 }
  0xf7   : > { %4036 = vst [vmem:[#allocation75_spill] sm:$0xff] %v2641_v54  ;;  %v2645_v61 = vpop.permute.xlu0 %478  ;;  %v2669_v54 = vld [vmem:[%s2147_s27 + $0x138] sm:$0xff] }
  0xf8   : > { %4037 = vst [vmem:[#allocation76_spill] sm:$0xff] %v2643_v49 }
  0xf9   : > { %4038 = vst [vmem:[#allocation77_spill] sm:$0xff] %v2645_v61 }
  0xfa   : > { %4045 = vst [vmem:[#allocation84_spill] sm:$0xff] %v2669_v54 }
  0xfc   : > { %636 = vrot.lane.b32.xlu2 %v2651_v35, %s2065_s30  ;;  %634 = vrot.lane.b32.xlu1 %v2648_v50, %s2065_s30  ;;  %v2690_v35 = vld [vmem:[%s2147_s27 + $0x158] sm:$0xff] }
  0xfd   : > { %632 = vrot.lane.b32.xlu0 %v2654_v44, %s2065_s30  ;;  %4051 = vst [vmem:[#allocation90_spill] sm:$0xff] %v2690_v35  ;;  %v2696_v44 = vld [vmem:[%s2147_s27 + $0x150] sm:$0xff] }
  0xfe   : > { %v2662_v49 = vpop.permute.xlu2 %506  ;;  %v2664_v61 = vpop.permute.xlu1 %486 }
  0xff   : > { %4042 = vst [vmem:[#allocation81_spill] sm:$0xff] %v2662_v49  ;;  %v2666_v55 = vpop.permute.xlu0 %484  ;;  %v2693_v49 = vld [vmem:[%s2147_s27 + $0x168] sm:$0xff] }
 0x100   : > { %4043 = vst [vmem:[#allocation82_spill] sm:$0xff] %v2664_v61 }
 0x101   : > { %4044 = vst [vmem:[#allocation83_spill] sm:$0xff] %v2666_v55 }
 0x102   : > { %4052 = vst [vmem:[#allocation91_spill] sm:$0xff] %v2693_v49 }
 0x104   : > { %642 = vrot.lane.b32.xlu2 %v2672_v60, %s2065_s30  ;;  %640 = vrot.lane.b32.xlu1 %v2669_v54, %s2065_s30 }
 0x105   : > { %638 = vrot.lane.b32.xlu0 %v2675_v30, %s2065_s30 }
 0x106   : > { %v2683_v61 = vpop.permute.xlu2 %512  ;;  %v2685_v55 = vpop.permute.xlu1 %492 }
 0x107   : > { %4048 = vst [vmem:[#allocation87_spill] sm:$0xff] %v2683_v61  ;;  %v2687_v50 = vpop.permute.xlu0 %490  ;;  %v2717_v61 = vld [vmem:[%s2147_s27 + $0x170] sm:$0xff] }
 0x108   : > { %4049 = vst [vmem:[#allocation88_spill] sm:$0xff] %v2685_v55  ;;  %v2714_v55 = vld [vmem:[%s2147_s27 + $0x180] sm:$0xff] }
 0x109   : > { %4050 = vst [vmem:[#allocation89_spill] sm:$0xff] %v2687_v50  ;;  %v2711_v50 = vld [vmem:[%s2147_s27 + $0x188] sm:$0xff] }
 0x10a   : > { %4054 = vst [vmem:[#allocation93_spill] sm:$0xff] %v2711_v50 }
 0x10b   : > { %4055 = vst [vmem:[#allocation94_spill] sm:$0xff] %v2714_v55 }
 0x10c   : > { %648 = vrot.lane.b32.xlu2 %v2693_v49, %s2065_s30  ;;  %646 = vrot.lane.b32.xlu1 %v2690_v35, %s2065_s30  ;;  %4056 = vst [vmem:[#allocation95_spill] sm:$0xff] %v2717_v61 }
 0x10d   : > { %644 = vrot.lane.b32.xlu0 %v2696_v44, %s2065_s30 }
 0x10e   : > { %v2704_v30 = vpop.permute.xlu2 %518  ;;  %v2706_v54 = vpop.permute.xlu1 %498 }
 0x10f   : > { %v2708_v60 = vpop.permute.xlu0 %496 }
 0x110   : > { %4053 = vst [vmem:[#allocation92_spill] sm:$0xff] %v2708_v60 }
 0x114   : > { %654 = vrot.lane.b32.xlu2 %v2711_v50, %s2065_s30  ;;  %652 = vrot.lane.b32.xlu1 %v2714_v55, %s2065_s30 }
 0x115   : > { %650 = vrot.lane.b32.xlu0 %v2717_v61, %s2065_s30 }
 0x116   : > { %v2725_v49 = vpop.permute.xlu2 %524  ;;  %v2727_v35 = vpop.permute.xlu1 %504 }
 0x117   : > { %v2729_v60 = vpop.permute.xlu0 %502 }
 0x118   : > { %4057 = vst [vmem:[#allocation96_spill] sm:$0xff] %v2729_v60 }
 0x11c   : > { %694 = vrot.lane.b32.xlu2 %v2150_v0, %s2066_s3  ;;  %692 = vrot.lane.b32.xlu1 %v2165_v4, %s2066_s3 }
 0x11d   : > { %690 = vrot.lane.b32.xlu0 %v2153_v1, %s2066_s3 }
 0x11e   : > { %v2737_v50 = vpop.permute.xlu1 %510  ;;  %v2739_v55 = vpop.permute.xlu2 %594 }
 0x11f   : > { %v2741_v61 = vpop.permute.xlu0 %508 }
 0x124   : > { %700 = vrot.lane.b32.xlu2 %v2177_v7, %s2066_s3  ;;  %698 = vrot.lane.b32.xlu1 %v2180_v8, %s2066_s3 }
 0x125   : > { %696 = vrot.lane.b32.xlu0 %v2162_v3, %s2066_s3 }
 0x126   : > { %v2749_v60 = vpop.permute.xlu1 %516  ;;  %v2751_v4 = vpop.permute.xlu2 %600 }
 0x127   : > { %4058 = vst [vmem:[#allocation97_spill] sm:$0xff] %v2749_v60  ;;  %v2753_v1 = vpop.permute.xlu0 %514  ;;  %v4126_v60 = vld [vmem:[#allocation66_spill] sm:$0xff] }
 0x128   : > { %4059 = vst [vmem:[#allocation98_spill] sm:$0xff] %v2751_v4 }
 0x129   : > { %4060 = vst [vmem:[#allocation99_spill] sm:$0xff] %v2753_v1  ;;  %v4108_v1 = vld [vmem:[#allocation48_spill] sm:$0xff] }
 0x12c   : > { %706 = vrot.lane.b32.xlu2 %v2192_v10, %s2066_s3  ;;  %704 = vrot.lane.b32.xlu1 %v2195_v11, %s2066_s3 }
 0x12d   : > { %702 = vrot.lane.b32.xlu0 %v2174_v6, %s2066_s3 }
 0x12e   : > { %v2761_v7 = vpop.permute.xlu1 %522  ;;  %v2763_v8 = vpop.permute.xlu2 %606 }
 0x12f   : > { %4061 = vst [vmem:[#allocation100_spill] sm:$0xff] %v2761_v7  ;;  %v2765_v3 = vpop.permute.xlu0 %520  ;;  %v4101_v7 = vld [vmem:[#allocation42_spill] sm:$0xff] }
 0x130   : > { %4062 = vst [vmem:[#allocation101_spill] sm:$0xff] %v2763_v8 }
 0x131   : > { %4063 = vst [vmem:[#allocation102_spill] sm:$0xff] %v2765_v3 }
 0x134   : > { %712 = vrot.lane.b32.xlu2 %v2207_v13, %s2066_s3  ;;  %710 = vrot.lane.b32.xlu1 %v2210_v14, %s2066_s3 }
 0x135   : > { %708 = vrot.lane.b32.xlu0 %v2189_v9, %s2066_s3 }
 0x136   : > { %v2773_v10 = vpop.permute.xlu2 %612  ;;  %v2775_v11 = vpop.permute.xlu1 %592 }
 0x137   : > { %4064 = vst [vmem:[#allocation103_spill] sm:$0xff] %v2773_v10  ;;  %v2777_v6 = vpop.permute.xlu0 %526  ;;  %v2974_v10 = vld [vmem:[%s2147_s27 + $0x182] sm:$0xff] }
 0x138   : > { %4065 = vst [vmem:[#allocation104_spill] sm:$0xff] %v2775_v11 }
 0x139   : > { %4066 = vst [vmem:[#allocation105_spill] sm:$0xff] %v2777_v6 }
 0x13c   : > { %718 = vrot.lane.b32.xlu2 %v2222_v16, %s2066_s3  ;;  %716 = vrot.lane.b32.xlu1 %v2225_v17, %s2066_s3 }
 0x13d   : > { %714 = vrot.lane.b32.xlu0 %v2204_v12, %s2066_s3 }
 0x13e   : > { %v2785_v3 = vpop.permute.xlu2 %618  ;;  %v2787_v8 = vpop.permute.xlu1 %598 }
 0x13f   : > { %v2789_v9 = vpop.permute.xlu0 %596 }
 0x144   : > { %724 = vrot.lane.b32.xlu2 %v2237_v19, %s2066_s3  ;;  %722 = vrot.lane.b32.xlu1 %v2240_v20, %s2066_s3 }
 0x145   : > { %720 = vrot.lane.b32.xlu0 %v2219_v15, %s2066_s3 }
 0x146   : > { %v2797_v16 = vpop.permute.xlu2 %624  ;;  %v2799_v17 = vpop.permute.xlu1 %604 }
 0x147   : > { %4067 = vst [vmem:[#allocation106_spill] sm:$0xff] %v2799_v17  ;;  %v2801_v12 = vpop.permute.xlu0 %602 }
 0x148   : > { %4068 = vst [vmem:[#allocation107_spill] sm:$0xff] %v2801_v12 }
 0x14c   : > { %730 = vrot.lane.b32.xlu2 %v2252_v22, %s2066_s3  ;;  %728 = vrot.lane.b32.xlu1 %v2255_v23, %s2066_s3 }
 0x14d   : > { %726 = vrot.lane.b32.xlu0 %v2234_v18, %s2066_s3 }
 0x14e   : > { %v2809_v19 = vpop.permute.xlu2 %630  ;;  %v2811_v20 = vpop.permute.xlu1 %610 }
 0x14f   : > { %4069 = vst [vmem:[#allocation108_spill] sm:$0xff] %v2811_v20  ;;  %v2813_v15 = vpop.permute.xlu0 %608 }
 0x150   : > { %4070 = vst [vmem:[#allocation109_spill] sm:$0xff] %v2813_v15  ;;  %v2852_v15 = vld [vmem:[%s2147_s27 + $0x189] sm:$0xff] }
 0x151   : > { %4076 = vst [vmem:[#allocation115_spill] sm:$0xff] %v2852_v15 }
 0x154   : > { %736 = vrot.lane.b32.xlu2 %v2267_v25, %s2066_s3  ;;  %734 = vrot.lane.b32.xlu1 %v2270_v26, %s2066_s3 }
 0x155   : > { %732 = vrot.lane.b32.xlu0 %v2249_v21, %s2066_s3 }
 0x156   : > { %v2821_v22 = vpop.permute.xlu2 %636  ;;  %v2823_v12 = vpop.permute.xlu1 %616 }
 0x157   : > { %4071 = vst [vmem:[#allocation110_spill] sm:$0xff] %v2821_v22  ;;  %v2825_v17 = vpop.permute.xlu0 %614  ;;  %v4133_v22 = vld [vmem:[#allocation69_spill] sm:$0xff] }
 0x158   : > { %4072 = vst [vmem:[#allocation111_spill] sm:$0xff] %v2823_v12 }
 0x159   : > { %4073 = vst [vmem:[#allocation112_spill] sm:$0xff] %v2825_v17  ;;  %v2855_v17 = vld [vmem:[%s2147_s27 + $0x181] sm:$0xff] }
 0x15a   : > { %4077 = vst [vmem:[#allocation116_spill] sm:$0xff] %v2855_v17 }
 0x15c   : > { %742 = vrot.lane.b32.xlu2 %v2282_v28, %s2066_s3  ;;  %740 = vrot.lane.b32.xlu1 %v2285_v29, %s2066_s3 }
 0x15d   : > { %738 = vrot.lane.b32.xlu0 %v2264_v24, %s2066_s3 }
 0x15e   : > { %v2833_v25 = vpop.permute.xlu2 %642  ;;  %v2835_v21 = vpop.permute.xlu1 %622 }
 0x15f   : > { %4074 = vst [vmem:[#allocation113_spill] sm:$0xff] %v2833_v25  ;;  %v2837_v26 = vpop.permute.xlu0 %620  ;;  %v4106_v25 = vld [vmem:[#allocation38_spill] sm:$0xff] }
 0x164   : > { %748 = vrot.lane.b32.xlu2 %v2295_v31, %s2066_s3  ;;  %746 = vrot.lane.b32.xlu1 %v2298_v32, %s2066_s3 }
 0x165   : > { %744 = vrot.lane.b32.xlu0 %v2279_v27, %s2066_s3 }
 0x166   : > { %v2845_v20 = vpop.permute.xlu2 %648  ;;  %v2847_v29 = vpop.permute.xlu1 %628 }
 0x167   : > { %4075 = vst [vmem:[#allocation114_spill] sm:$0xff] %v2845_v20  ;;  %v2849_v24 = vpop.permute.xlu0 %626  ;;  %v4098_v20 = vld [vmem:[#allocation30_spill] sm:$0xff] }
 0x16c   : > { %788 = vrot.lane.b32.xlu2 %v2309_v34, %s2067_s4  ;;  %752 = vrot.lane.b32.xlu1 %v2852_v15, %s2066_s3 }
 0x16d   : > { %750 = vrot.lane.b32.xlu0 %v2855_v17, %s2066_s3 }
 0x16e   : > { %v2863_v31 = vpop.permute.xlu2 %654  ;;  %v2865_v32 = vpop.permute.xlu1 %634 }
 0x16f   : > { %4078 = vst [vmem:[#allocation117_spill] sm:$0xff] %v2863_v31  ;;  %v2867_v12 = vpop.permute.xlu0 %632 }
 0x174   : > { %794 = vrot.lane.b32.xlu2 %v2323_v38, %s2067_s4  ;;  %792 = vrot.lane.b32.xlu1 %v2326_v39, %s2067_s4  ;;  %v4110_v38 = vld [vmem:[#allocation43_spill] sm:$0xff] }
 0x175   : > { %790 = vrot.lane.b32.xlu0 %v2306_v33, %s2067_s4 }
 0x176   : > { %v2875_v34 = vpop.permute.xlu2 %694  ;;  %v2877_v15 = vpop.permute.xlu1 %640 }
 0x177   : > { %v2879_v17 = vpop.permute.xlu0 %638 }
 0x17c   : > { %800 = vrot.lane.b32.xlu2 %v2340_v42, %s2067_s4  ;;  %798 = vrot.lane.b32.xlu1 %v2343_v43, %s2067_s4 }
 0x17d   : > { %796 = vrot.lane.b32.xlu0 %v2320_v37, %s2067_s4 }
 0x17e   : > { %v2887_v31 = vpop.permute.xlu2 %700  ;;  %v2889_v6 = vpop.permute.xlu1 %646 }
 0x17f   : > { %4079 = vst [vmem:[#allocation118_spill] sm:$0xff] %v2887_v31  ;;  %v2891_v33 = vpop.permute.xlu0 %644 }
 0x180   : > { %4080 = vst [vmem:[#allocation119_spill] sm:$0xff] %v2891_v33  ;;  %v4107_v33 = vld [vmem:[#allocation45_spill] sm:$0xff] }
 0x184   : > { %806 = vrot.lane.b32.xlu2 %v2357_v46, %s2067_s4  ;;  %804 = vrot.lane.b32.xlu1 %v2360_v47, %s2067_s4 }
 0x185   : > { %802 = vrot.lane.b32.xlu0 %v2337_v41, %s2067_s4 }
 0x186   : > { %v2899_v42 = vpop.permute.xlu2 %706  ;;  %v2901_v43 = vpop.permute.xlu1 %652 }
 0x187   : > { %4081 = vst [vmem:[#allocation120_spill] sm:$0xff] %v2899_v42  ;;  %v2903_v37 = vpop.permute.xlu0 %650 }
 0x188   : > { %4082 = vst [vmem:[#allocation121_spill] sm:$0xff] %v2903_v37 }
 0x18c   : > { %812 = vrot.lane.b32.xlu2 %v2378_v52, %s2067_s4  ;;  %810 = vrot.lane.b32.xlu1 %v2381_v53, %s2067_s4 }
 0x18d   : > { %808 = vrot.lane.b32.xlu0 %v2354_v45, %s2067_s4 }
 0x18e   : > { %v2911_v46 = vpop.permute.xlu2 %712  ;;  %v2913_v47 = vpop.permute.xlu1 %692 }
 0x18f   : > { %4083 = vst [vmem:[#allocation122_spill] sm:$0xff] %v2911_v46  ;;  %v2915_v41 = vpop.permute.xlu0 %690 }
 0x190   : > { %4084 = vst [vmem:[#allocation123_spill] sm:$0xff] %v2915_v41 }
 0x194   : > { %818 = vrot.lane.b32.xlu2 %v2399_v58, %s2067_s4  ;;  %816 = vrot.lane.b32.xlu1 %v2402_v59, %s2067_s4 }
 0x195   : > { %814 = vrot.lane.b32.xlu0 %v2375_v51, %s2067_s4 }
 0x196   : > { %v2923_v52 = vpop.permute.xlu2 %718  ;;  %v2925_v42 = vpop.permute.xlu1 %698 }
 0x197   : > { %4085 = vst [vmem:[#allocation124_spill] sm:$0xff] %v2925_v42  ;;  %v697_v31 = vpop.permute.xlu0 %696 }
 0x19c   : > { %824 = vrot.lane.b32.xlu2 %v2420_v2, %s2067_s4  ;;  %822 = vrot.lane.b32.xlu1 %v2423_v5, %s2067_s4 }
 0x19d   : > { %820 = vrot.lane.b32.xlu0 %v2396_v57, %s2067_s4 }
 0x19e   : > { %v2933_v58 = vpop.permute.xlu2 %724  ;;  %v2935_v59 = vpop.permute.xlu1 %704 }
 0x19f   : > { %4086 = vst [vmem:[#allocation125_spill] sm:$0xff] %v2935_v59  ;;  %v2937_v46 = vpop.permute.xlu0 %702 }
 0x1a0   : > { %4087 = vst [vmem:[#allocation126_spill] sm:$0xff] %v2937_v46 }
 0x1a4   : > { %830 = vrot.lane.b32.xlu2 %v2441_v40, %s2067_s4  ;;  %828 = vrot.lane.b32.xlu1 %v2444_v62, %s2067_s4  ;;  %v2989_v62 = vld [vmem:[%s2147_s27 + $0x18a] sm:$0xff] }
 0x1a5   : > { %826 = vrot.lane.b32.xlu0 %v2417_v63, %s2067_s4 }
 0x1a6   : > { %v2945_v51 = vpop.permute.xlu2 %730  ;;  %v2947_v5 = vpop.permute.xlu1 %710 }
 0x1a7   : > { %4088 = vst [vmem:[#allocation127_spill] sm:$0xff] %v2947_v5  ;;  %v2949_v57 = vpop.permute.xlu0 %708  ;;  %v4092_v5 = vld [vmem:[#allocation31_spill] sm:$0xff] }
 0x1a8   : > { %4089 = vst [vmem:[#allocation128_spill] sm:$0xff] %v2949_v57  ;;  %v4093_v57 = vld [vmem:[#allocation32_spill] sm:$0xff] }
 0x1a9   : > { %4096 = vst [vmem:[#allocation32_spill] sm:$0xff] %v2974_v10 }
 0x1ac   : > { %836 = vrot.lane.b32.xlu2 %v2462_v36, %s2067_s4  ;;  %834 = vrot.lane.b32.xlu1 %v2465_v56, %s2067_s4  ;;  %v4094_v36 = vld [vmem:[#allocation26_spill] sm:$0xff] }
 0x1ad   : > { %832 = vrot.lane.b32.xlu0 %v2438_v48, %s2067_s4 }
 0x1ae   : > { %v2957_v40 = vpop.permute.xlu2 %736  ;;  %v2959_v46 = vpop.permute.xlu1 %716 }
 0x1af   : > { %4090 = vst [vmem:[#allocation129_spill] sm:$0xff] %v2957_v40  ;;  %v2961_v41 = vpop.permute.xlu0 %714 }
 0x1b0   : > { %4091 = vst [vmem:[#allocation130_spill] sm:$0xff] %v2961_v41  ;;  %v4097_v41 = vld [vmem:[#allocation36_spill] sm:$0xff] }
 0x1b1   : > { %4100 = vst [vmem:[#allocation36_spill] sm:$0xff] %v2989_v62 }
 0x1b4   : > { %842 = vrot.lane.b32.xlu2 %v4092_v5, %s2067_s4  ;;  %840 = vrot.lane.b32.xlu1 %v4093_v57, %s2067_s4 }
 0x1b5   : > { %838 = vrot.lane.b32.xlu0 %v4094_v36, %s2067_s4 }
 0x1b6   : > { %v2969_v56 = vpop.permute.xlu2 %742  ;;  %v2971_v11 = vpop.permute.xlu1 %722 }
 0x1b7   : > { %4095 = vst [vmem:[#allocation31_spill] sm:$0xff] %v2969_v56  ;;  %v721_v48 = vpop.permute.xlu0 %720  ;;  %v4105_v56 = vld [vmem:[#allocation14_spill] sm:$0xff] }
 0x1b8   : > { %v1182_v42 = vsel %vm1178_vm0, %v4106_v25, %v4105_v56 }
 0x1bc   : > { %848 = vrot.lane.b32.xlu2 %v2974_v10, %s2067_s4  ;;  %846 = vrot.lane.b32.xlu1 %v4097_v41, %s2067_s4  ;;  %v4102_v10 = vld [vmem:[#allocation44_spill] sm:$0xff] }
 0x1bd   : > { %844 = vrot.lane.b32.xlu0 %v4098_v20, %s2067_s4 }
 0x1be   : > { %v2982_v59 = vpop.permute.xlu2 %748  ;;  %v2984_v37 = vpop.permute.xlu1 %728 }
 0x1bf   : > { %4099 = vst [vmem:[#allocation26_spill] sm:$0xff] %v2982_v59  ;;  %v2986_v36 = vpop.permute.xlu0 %726 }
 0x1c4   : > { %888 = vrot.lane.b32.xlu2 %v4101_v7, %s2068_s5  ;;  %886 = vrot.lane.b32.xlu1 %v4102_v10, %s2068_s5  ;;  %v1215_v7 = vsel %vm1211_vm1, %v1182_v42, %v4107_v33  ;;  %v4113_v42 = vld [vmem:[#allocation54_spill] sm:$0xff]  ;;  %v4127_v10 = vld [vmem:[#allocation68_spill] sm:$0xff] }
 0x1c5   : > { %850 = vrot.lane.b32.xlu0 %v2989_v62, %s2067_s4  ;;  %v4109_v62 = vld [vmem:[#allocation50_spill] sm:$0xff]  ;;  %s1859_s4 = sshll.u32 %s2053_s12, 8 }
 0x1c6   : > { %v2997_v41 = vpop.permute.xlu2 %788  ;;  %v2999_v20 = vpop.permute.xlu1 %734 }
 0x1c7   : > { %4103 = vst [vmem:[#allocation131_spill] sm:$0xff] %v2997_v41  ;;  %v3001_v59 = vpop.permute.xlu0 %732  ;;  %v1248_v41 = vsel %vm1244_vm2, %v1215_v7, %v2787_v8  ;;  %v4114_v7 = vld [vmem:[#allocation56_spill] sm:$0xff]  ;;  %v4115_v8 = vld [vmem:[#allocation49_spill] sm:$0xff] }
 0x1c8   : > { %4104 = vst [vmem:[#allocation132_spill] sm:$0xff] %v2999_v20  ;;  %v1281_v25 = vsel %vm1277_vm3, %v1248_v41, %v697_v31 }
 0x1cc   : > { %894 = vrot.lane.b32.xlu2 %v4108_v1, %s2068_s5  ;;  %892 = vrot.lane.b32.xlu1 %v4109_v62, %s2068_s5  ;;  %v4118_v62 = vld [vmem:[#allocation60_spill] sm:$0xff] }
 0x1cd   : > { %890 = vrot.lane.b32.xlu0 %v4110_v38, %s2068_s5 }
 0x1ce   : > { %v795_v56 = vpop.permute.xlu2 %794  ;;  %v3017_v53 = vpop.permute.xlu1 %740 }
 0x1cf   : > { %4111 = vst [vmem:[#allocation14_spill] sm:$0xff] %v3017_v53  ;;  %v3019_v33 = vpop.permute.xlu0 %738  ;;  %v3022_v1 = vsel %vm1310_vm4, %v1281_v25, %v795_v56  ;;  %v4119_v25 = vld [vmem:[#allocation62_spill] sm:$0xff]  ;;  %v4120_v56 = vld [vmem:[#allocation55_spill] sm:$0xff]  ;;  %v4125_v53 = vld [vmem:[#allocation64_spill] sm:$0xff] }
 0x1d0   : > { %4112 = vst [vmem:[#allocation38_spill] sm:$0xff] %v3022_v1 }
 0x1d4   : > { %900 = vrot.lane.b32.xlu2 %v4113_v42, %s2068_s5  ;;  %898 = vrot.lane.b32.xlu1 %v4114_v7, %s2068_s5  ;;  %v4124_v7 = vld [vmem:[#allocation37_spill] sm:$0xff] }
 0x1d5   : > { %896 = vrot.lane.b32.xlu0 %v4115_v8, %s2068_s5 }
 0x1d6   : > { %v3030_v38 = vpop.permute.xlu2 %800  ;;  %v3032_v31 = vpop.permute.xlu1 %746 }
 0x1d7   : > { %4116 = vst [vmem:[#allocation45_spill] sm:$0xff] %v3030_v38  ;;  %v3034_v41 = vpop.permute.xlu0 %744  ;;  %v4123_v38 = vld [vmem:[#allocation10_spill] sm:$0xff] }
 0x1d8   : > { %4117 = vst [vmem:[#allocation48_spill] sm:$0xff] %v3032_v31  ;;  %v1181_v31 = vsel %vm1178_vm0, %v4124_v7, %v4123_v38 }
 0x1d9   : > { %v1214_v4 = vsel %vm1211_vm1, %v1181_v31, %v4125_v53  ;;  %v4132_v31 = vld [vmem:[#allocation29_spill] sm:$0xff] }
 0x1dc   : > { %906 = vrot.lane.b32.xlu2 %v4118_v62, %s2068_s5  ;;  %904 = vrot.lane.b32.xlu1 %v4119_v25, %s2068_s5 }
 0x1dd   : > { %902 = vrot.lane.b32.xlu0 %v4120_v56, %s2068_s5  ;;  %v4128_v56 = vld [vmem:[#allocation61_spill] sm:$0xff] }
 0x1de   : > { %v3042_v42 = vpop.permute.xlu2 %806  ;;  %v3044_v1 = vpop.permute.xlu1 %752  ;;  %v1194_v40 = vsel %vm1178_vm0, %v4128_v56, %v4132_v31 }
 0x1df   : > { %4121 = vst [vmem:[#allocation49_spill] sm:$0xff] %v3042_v42  ;;  %v3046_v8 = vpop.permute.xlu0 %750  ;;  %v1247_v42 = vsel %vm1244_vm2, %v1214_v4, %v2789_v9  ;;  %v1227_v4 = vsel %vm1211_vm1, %v1194_v40, %v4133_v22  ;;  %v4134_v9 = vld [vmem:[#allocation72_spill] sm:$0xff]  ;;  %v4139_v40 = vld [vmem:[#allocation35_spill] sm:$0xff] }
 0x1e0   : > { %4122 = vst [vmem:[#allocation60_spill] sm:$0xff] %v3044_v1  ;;  %v1280_v1 = vsel %vm1277_vm3, %v1247_v42, %v2875_v34  ;;  %v4135_v34 = vld [vmem:[#allocation74_spill] sm:$0xff]  ;;  %v1260_v42 = vsel %vm1244_vm2, %v1227_v4, %v2835_v21 }
 0x1e4   : > { %912 = vrot.lane.b32.xlu2 %v4126_v60, %s2068_s5  ;;  %910 = vrot.lane.b32.xlu1 %v4127_v10, %s2068_s5 }
 0x1e5   : > { %908 = vrot.lane.b32.xlu0 %v4128_v56, %s2068_s5 }
 0x1e6   : > { %v3063_v20 = vpop.permute.xlu2 %812  ;;  %v793_v38 = vpop.permute.xlu1 %792 }
 0x1e7   : > { %4129 = vst [vmem:[#allocation62_spill] sm:$0xff] %v3063_v20  ;;  %v3065_v7 = vpop.permute.xlu0 %790  ;;  %v3068_v53 = vsel %vm1310_vm4, %v1280_v1, %v793_v38  ;;  %v4136_v20 = vld [vmem:[#allocation67_spill] sm:$0xff]  ;;  %v1293_v1 = vsel %vm1277_vm3, %v1260_v42, %v721_v48  ;;  %v4141_v48 = vld [vmem:[#allocation80_spill] sm:$0xff]  ;;  %v4142_v42 = vld [vmem:[#allocation73_spill] sm:$0xff] }
 0x1e8   : > { %4130 = vst [vmem:[#allocation10_spill] sm:$0xff] %v3065_v7  ;;  %v1197_v31 = vsel %vm1178_vm0, %v4136_v20, %v4139_v40  ;;  %v4140_v7 = vld [vmem:[#allocation75_spill] sm:$0xff] }
 0x1e9   : > { %4131 = vst [vmem:[#allocation37_spill] sm:$0xff] %v3068_v53  ;;  %v1230_v21 = vsel %vm1211_vm1, %v1197_v31, %v4140_v7  ;;  %v4144_v31 = vld [vmem:[#allocation41_spill] sm:$0xff] }
 0x1ea   : > { %v1263_v4 = vsel %vm1244_vm2, %v1230_v21, %v2847_v29 }
 0x1ec   : > { %918 = vrot.lane.b32.xlu2 %v4134_v9, %s2068_s5  ;;  %916 = vrot.lane.b32.xlu1 %v4135_v34, %s2068_s5 }
 0x1ed   : > { %914 = vrot.lane.b32.xlu0 %v4136_v20, %s2068_s5 }
 0x1ee   : > { %v819_v38 = vpop.permute.xlu2 %818  ;;  %v3084_v53 = vpop.permute.xlu1 %798 }
 0x1ef   : > { %4137 = vst [vmem:[#allocation64_spill] sm:$0xff] %v3084_v53  ;;  %v3086_v56 = vpop.permute.xlu0 %796  ;;  %v3089_v22 = vsel %vm1310_vm4, %v1293_v1, %v819_v38  ;;  %v1296_v1 = vsel %vm1277_vm3, %v1263_v4, %v2986_v36  ;;  %v4145_v53 = vld [vmem:[#allocation81_spill] sm:$0xff] }
 0x1f0   : > { %4138 = vst [vmem:[#allocation66_spill] sm:$0xff] %v3089_v22  ;;  %v1200_v22 = vsel %vm1178_vm0, %v4142_v42, %v4144_v31  ;;  %v4150_v31 = vld [vmem:[#allocation87_spill] sm:$0xff] }
 0x1f1   : > { %v1233_v29 = vsel %vm1211_vm1, %v1200_v22, %v4145_v53  ;;  %v4146_v22 = vld [vmem:[#allocation13_spill] sm:$0xff] }
 0x1f2   : > { %v1266_v36 = vsel %vm1244_vm2, %v1233_v29, %v2865_v32  ;;  %v4148_v32 = vld [vmem:[#allocation79_spill] sm:$0xff] }
 0x1f3   : > { %v1299_v21 = vsel %vm1277_vm3, %v1266_v36, %v3001_v59  ;;  %v4151_v36 = vld [vmem:[#allocation88_spill] sm:$0xff] }
 0x1f4   : > { %934 = vrot.lane.b32.xlu2 %v2696_v44, %s2068_s5  ;;  %922 = vrot.lane.b32.xlu1 %v4141_v48, %s2068_s5 }
 0x1f5   : > { %920 = vrot.lane.b32.xlu0 %v4142_v42, %s2068_s5 }
 0x1f6   : > { %v825_v38 = vpop.permute.xlu2 %824  ;;  %v3106_v20 = vpop.permute.xlu1 %804 }
 0x1f7   : > { %v3108_v40 = vpop.permute.xlu0 %802  ;;  %v3111_v7 = vsel %vm1310_vm4, %v1296_v1, %v825_v38  ;;  %v4147_v1 = vld [vmem:[#allocation47_spill] sm:$0xff] }
 0x1f8   : > { %4143 = vst [vmem:[#allocation68_spill] sm:$0xff] %v3111_v7  ;;  %v1203_v38 = vsel %vm1178_vm0, %v4148_v32, %v4147_v1 }
 0x1f9   : > { %v1236_v29 = vsel %vm1211_vm1, %v1203_v38, %v4150_v31  ;;  %v4153_v38 = vld [vmem:[#allocation16_spill] sm:$0xff] }
 0x1fa   : > { %v4156_v31 = vld [vmem:[#allocation28_spill] sm:$0xff] }
 0x1fc   : > { %1114 = vrot.lane.b32.xlu2 %v2420_v2, %s2069_s6  ;;  %1032 = vrot.lane.b32.xlu1 %v2282_v28, %s2070_s7  ;;  %v1193_v28 = vsel %vm1178_vm0, %v4118_v62, %v4146_v22  ;;  %v4152_v62 = vld [vmem:[#allocation89_spill] sm:$0xff] }
 0x1fd   : > { %1016 = vrot.lane.b32.xlu0 %v2234_v18, %s2070_s7  ;;  %v4149_v18 = vld [vmem:[#allocation24_spill] sm:$0xff]  ;;  %v1226_v7 = vsel %vm1211_vm1, %v1193_v28, %v4151_v36 }
 0x1fe   : > { %v831_v4 = vpop.permute.xlu2 %830  ;;  %v3128_v42 = vpop.permute.xlu1 %810  ;;  %v1192_v59 = vsel %vm1178_vm0, %v4119_v25, %v4149_v18  ;;  %v1269_v25 = vsel %vm1244_vm2, %v1236_v29, %v2877_v15  ;;  %v4155_v18 = vld [vmem:[#allocation85_spill] sm:$0xff] }
 0x1ff   : > { %v3130_v53 = vpop.permute.xlu0 %808  ;;  %v3133_v2 = vsel %vm1310_vm4, %v1299_v21, %v831_v4  ;;  %v1225_v21 = vsel %vm1211_vm1, %v1192_v59, %v4152_v62  ;;  %v1259_v4 = vsel %vm1244_vm2, %v1226_v7, %v2837_v26 }
 0x200   : > { %v1258_v22 = vsel %vm1244_vm2, %v1225_v21, %v2785_v3 }
 0x201   : > { %v1291_v26 = vsel %vm1277_vm3, %v1258_v22, %v2959_v46  ;;  %v1195_v46 = vsel %vm1178_vm0, %v4127_v10, %v4156_v31 }
 0x204   : > { %1000 = vrot.lane.b32.xlu2 %v2210_v14, %s2070_s7  ;;  %984 = vrot.lane.b32.xlu1 %v2150_v0, %s2070_s7  ;;  %v1292_v14 = vsel %vm1277_vm3, %v1259_v4, %v2923_v52  ;;  %v1302_v0 = vsel %vm1277_vm3, %v1269_v25, %v3019_v33  ;;  %v1196_v52 = vsel %vm1178_vm0, %v4126_v60, %v4153_v38  ;;  %v4154_v33 = vld [vmem:[#allocation53_spill] sm:$0xff]  ;;  %v4157_v60 = vld [vmem:[#allocation92_spill] sm:$0xff] }
 0x205   : > { %1130 = vrot.lane.b32.xlu0 %v4093_v57, %s2069_s6  ;;  %v1206_v59 = vsel %vm1178_vm0, %v4155_v18, %v4154_v33  ;;  %v1229_v36 = vsel %vm1211_vm1, %v1196_v52, %v2706_v54  ;;  %v1228_v62 = vsel %vm1211_vm1, %v1195_v46, %v4157_v60  ;;  %v4165_v46 = vld [vmem:[#allocation23_spill] sm:$0xff]  ;;  %v4167_v60 = vld [vmem:[#allocation65_spill] sm:$0xff] }
 0x206   : > { %v837_v28 = vpop.permute.xlu2 %836  ;;  %v817_v1 = vpop.permute.xlu1 %816  ;;  %v1239_v29 = vsel %vm1211_vm1, %v1206_v59, %v2704_v30  ;;  %v1262_v21 = vsel %vm1244_vm2, %v1229_v36, %v2849_v24  ;;  %v4158_v30 = vld [vmem:[#allocation90_spill] sm:$0xff]  ;;  %v1261_v54 = vsel %vm1244_vm2, %v1228_v62, %v2797_v16  ;;  %v4168_v62 = vld [vmem:[#allocation40_spill] sm:$0xff] }
 0x207   : > { %v815_v7 = vpop.permute.xlu0 %814  ;;  %v3169_v15 = vsel %vm1310_vm4, %v1302_v0, %v837_v28  ;;  %v3172_v57 = vsel %vm1310_vm4, %v1292_v14, %v817_v1  ;;  %v1272_v10 = vsel %vm1244_vm2, %v1239_v29, %v2889_v6  ;;  %v1294_v24 = vsel %vm1277_vm3, %v1261_v54, %v2971_v11  ;;  %v4159_v0 = vld [vmem:[#allocation19_spill] sm:$0xff]  ;;  %v4162_v11 = vld [vmem:[#allocation34_spill] sm:$0xff] }
 0x208   : > { %v3175_v3 = vsel %vm1310_vm4, %v1291_v26, %v815_v7  ;;  %v4161_v28 = vld [vmem:[#allocation91_spill] sm:$0xff]  ;;  %v1198_v26 = vsel %vm1178_vm0, %v4135_v34, %v4162_v11  ;;  %v197_v59 = vld [vmem:[%s2147_s27 + $0x8] sm:$0xff]  ;;  %v4173_v11 = vld [vmem:[#allocation5_spill] sm:$0xff] }
 0x209   : > { %v4166_v29 = vld [vmem:[#allocation78_spill] sm:$0xff] }
 0x20a   : > { %v1202_v36 = vsel %vm1178_vm0, %v4166_v29, %v4165_v46 }
 0x20c   : > { %1098 = vrot.lane.b32.xlu2 %v2354_v45, %s2069_s6  ;;  %1082 = vrot.lane.b32.xlu1 %v2326_v39, %s2069_s6  ;;  %v1295_v45 = vsel %vm1277_vm3, %v1262_v21, %v2933_v58  ;;  %v1305_v39 = vsel %vm1277_vm3, %v1272_v10, %v3034_v41  ;;  %v1199_v58 = vsel %vm1178_vm0, %v4134_v9, %v4159_v0  ;;  %v4160_v41 = vld [vmem:[#allocation59_spill] sm:$0xff]  ;;  %v4163_v9 = vld [vmem:[#allocation96_spill] sm:$0xff] }
 0x20d   : > { %936 = vrot.lane.b32.xlu0 %v4158_v30, %s2068_s5  ;;  %v1209_v1 = vsel %vm1178_vm0, %v4161_v28, %v4160_v41  ;;  %v1232_v38 = vsel %vm1211_vm1, %v1199_v58, %v2727_v35  ;;  %v1231_v52 = vsel %vm1211_vm1, %v1198_v26, %v4163_v9  ;;  %v1201_v21 = vsel %vm1178_vm0, %v4141_v48, %v4168_v62  ;;  %v4172_v58 = vld [vmem:[#allocation132_spill] sm:$0xff] }
 0x20e   : > { %v843_v4 = vpop.permute.xlu2 %842  ;;  %v823_v25 = vpop.permute.xlu1 %822  ;;  %v1242_v7 = vsel %vm1211_vm1, %v1209_v1, %v2725_v49  ;;  %v1265_v33 = vsel %vm1244_vm2, %v1232_v38, %v2867_v12  ;;  %v1264_v49 = vsel %vm1244_vm2, %v1231_v52, %v2809_v19  ;;  %v1235_v10 = vsel %vm1211_vm1, %v1202_v36, %v2737_v50  ;;  %v4169_v50 = vld [vmem:[#allocation110_spill] sm:$0xff]  ;;  %v4174_v26 = vld [vmem:[#allocation44_spill] sm:$0xff]  ;;  %v4175_v38 = vld [vmem:[#allocation27_spill] sm:$0xff] }
 0x20f   : > { %v821_v22 = vpop.permute.xlu0 %820  ;;  %v3211_v6 = vsel %vm1310_vm4, %v1305_v39, %v843_v4  ;;  %v3214_v14 = vsel %vm1310_vm4, %v1295_v45, %v823_v25  ;;  %v1275_v34 = vsel %vm1244_vm2, %v1242_v7, %v2901_v43  ;;  %v1297_v12 = vsel %vm1277_vm3, %v1264_v49, %v2984_v37  ;;  %v1940_v45 = vld [vmem:[%s2147_s27 + $0x39] sm:$0xff]  ;;  %v4178_v49 = vld [vmem:[#allocation46_spill] sm:$0xff]  ;;  %v4185_v36 = vld [vmem:[#allocation119_spill] sm:$0xff] }
 0x210   : > { %v3217_v16 = vsel %vm1310_vm4, %v1294_v24, %v821_v22  ;;  %v1234_v39 = vsel %vm1211_vm1, %v1201_v21, %v2741_v61  ;;  %v1268_v4 = vsel %vm1244_vm2, %v1235_v10, %v2879_v17  ;;  %v4171_v24 = vld [vmem:[#allocation10_spill] sm:$0xff]  ;;  %v1183_v7 = vsel %vm1178_vm0, %v4174_v26, %v4173_v11  ;;  %v4176_v9 = vld [vmem:[#allocation84_spill] sm:$0xff]  ;;  %v4187_v21 = vld [vmem:[#allocation113_spill] sm:$0xff] }
 0x211   : > { %v1205_v52 = vsel %vm1178_vm0, %v4176_v9, %v4175_v38  ;;  %v4194_v11 = vld [vmem:[#allocation52_spill] sm:$0xff]  ;;  %v4196_v9 = vld [vmem:[#allocation101_spill] sm:$0xff] }
 0x212   : > { %v1207_v26 = vsel %vm1178_vm0, %v2696_v44, %v4194_v11  ;;  %v4200_v44 = vld [vmem:[#allocation125_spill] sm:$0xff] }
 0x214   : > { %1116 = vrot.lane.b32.xlu2 %v2417_v63, %s2069_s6  ;;  %1034 = vrot.lane.b32.xlu1 %v2279_v27, %s2070_s7  ;;  %v1298_v63 = vsel %vm1277_vm3, %v1265_v33, %v2945_v51  ;;  %v1308_v27 = vsel %vm1277_vm3, %v1275_v34, %v3046_v8  ;;  %v4164_v51 = vld [vmem:[#allocation15_spill] sm:$0xff] }
 0x215   : > { %1018 = vrot.lane.b32.xlu0 %v2255_v23, %s2070_s7  ;;  %v1180_v8 = vsel %vm1178_vm0, %v197_v59, %v4164_v51  ;;  %v4177_v33 = vld [vmem:[#allocation71_spill] sm:$0xff]  ;;  %v4181_v59 = vld [vmem:[#allocation98_spill] sm:$0xff] }
 0x216   : > { %v849_v35 = vpop.permute.xlu2 %848  ;;  %v829_v18 = vpop.permute.xlu1 %828  ;;  %v1213_v37 = vsel %vm1211_vm1, %v1180_v8, %v4167_v60  ;;  %v1216_v34 = vsel %vm1211_vm1, %v1183_v7, %v4177_v33  ;;  %v4183_v51 = vld [vmem:[#allocation6_spill] sm:$0xff]  ;;  %v4184_v8 = vld [vmem:[#allocation99_spill] sm:$0xff]  ;;  %v4195_v7 = vld [vmem:[#allocation100_spill] sm:$0xff] }
 0x217   : > { %v827_v43 = vpop.permute.xlu0 %826  ;;  %v3254_v31 = vsel %vm1310_vm4, %v1308_v27, %v849_v35  ;;  %v3257_v23 = vsel %vm1310_vm4, %v1298_v63, %v829_v18  ;;  %v1246_v54 = vsel %vm1244_vm2, %v1213_v37, %v2739_v55  ;;  %v1267_v55 = vsel %vm1244_vm2, %v1234_v39, %v4169_v50  ;;  %v4179_v63 = vld [vmem:[#allocation86_spill] sm:$0xff]  ;;  %v4180_v35 = vld [vmem:[#allocation97_spill] sm:$0xff]  ;;  %v4186_v37 = vld [vmem:[#allocation124_spill] sm:$0xff] }
 0x218   : > { %v3260_v19 = vsel %vm1310_vm4, %v1297_v12, %v827_v43  ;;  %v1279_v48 = vsel %vm1277_vm3, %v1246_v54, %v2913_v47  ;;  %v1300_v17 = vsel %vm1277_vm3, %v1267_v55, %v4172_v58  ;;  %v1204_v27 = vsel %vm1178_vm0, %v4179_v63, %v4178_v49  ;;  %v4182_v43 = vld [vmem:[#allocation12_spill] sm:$0xff]  ;;  %v4188_v54 = vld [vmem:[#allocation31_spill] sm:$0xff]  ;;  %v4189_v50 = vld [vmem:[#allocation14_spill] sm:$0xff] }
 0x219   : > { %v1312_v22 = vsel %vm1310_vm4, %v1279_v48, %v4171_v24  ;;  %v1238_v18 = vsel %vm1211_vm1, %v1205_v52, %v4180_v35  ;;  %v1249_v12 = vsel %vm1244_vm2, %v1216_v34, %v4181_v59  ;;  %v1237_v46 = vsel %vm1211_vm1, %v1204_v27, %v4184_v8  ;;  %v4197_v33 = vld [vmem:[#allocation22_spill] sm:$0xff]  ;;  %v4199_v27 = vld [vmem:[#allocation121_spill] sm:$0xff] }
 0x21a   : > { %v1271_v60 = vsel %vm1244_vm2, %v1238_v18, %v4185_v36  ;;  %v1282_v62 = vsel %vm1277_vm3, %v1249_v12, %v4186_v37  ;;  %v1270_v10 = vsel %vm1244_vm2, %v1237_v46, %v4187_v21  ;;  %v1941_v34 = vld [vmem:[%s2147_s27 + $0x169] sm:$0xff]  ;;  %v196_v37 = vld [vmem:[%s2147_s27] sm:$0xff] }
 0x21b   : > { %v1315_v39 = vsel %vm1310_vm4, %v1282_v62, %v3086_v56  ;;  %v1303_v55 = vsel %vm1277_vm3, %v1270_v10, %v4189_v50  ;;  %v1942_v59 = vld [vmem:[%s2147_s27 + $0x109] sm:$0xff]  ;;  %v4203_v62 = vld [vmem:[#allocation48_spill] sm:$0xff] }
 0x21c   : > { %1002 = vrot.lane.b32.xlu2 %v2207_v13, %s2070_s7  ;;  %986 = vrot.lane.b32.xlu1 %v1940_v45, %s2070_s7  ;;  %v4170_v13 = vld [vmem:[#allocation129_spill] sm:$0xff]  ;;  %v1304_v45 = vsel %vm1277_vm3, %v1271_v60, %v4188_v54  ;;  %v4201_v12 = vld [vmem:[#allocation114_spill] sm:$0xff]  ;;  %v4206_v50 = vld [vmem:[#allocation56_spill] sm:$0xff] }
 0x21d   : > { %1132 = vrot.lane.b32.xlu0 %v4092_v5, %s2069_s6  ;;  %v1301_v25 = vsel %vm1277_vm3, %v1268_v4, %v4170_v13 }
 0x21e   : > { %v889_v0 = vpop.permute.xlu2 %888  ;;  %v835_v61 = vpop.permute.xlu1 %834 }
 0x21f   : > { %v833_v41 = vpop.permute.xlu0 %832  ;;  %v3297_v47 = vsel %vm1343_vm5, %v1312_v22, %v889_v0  ;;  %v3300_v5 = vsel %vm1310_vm4, %v1301_v25, %v835_v61  ;;  %v4190_v22 = vld [vmem:[#allocation17_spill] sm:$0xff]  ;;  %v4191_v0 = vld [vmem:[#allocation50_spill] sm:$0xff] }
 0x220   : > { %v3303_v1 = vsel %vm1310_vm4, %v1300_v17, %v833_v41  ;;  %v1186_v56 = vsel %vm1178_vm0, %v4191_v0, %v4190_v22  ;;  %v4192_v61 = vld [vmem:[#allocation33_spill] sm:$0xff]  ;;  %v4208_v0 = vld [vmem:[#allocation83_spill] sm:$0xff] }
 0x221   : > { %v1208_v58 = vsel %vm1178_vm0, %v4158_v30, %v4192_v61  ;;  %v4193_v17 = vld [vmem:[#allocation77_spill] sm:$0xff]  ;;  %v4198_v30 = vld [vmem:[#allocation102_spill] sm:$0xff] }
 0x222   : > { %v1219_v41 = vsel %vm1211_vm1, %v1186_v56, %v4193_v17  ;;  %v1241_v38 = vsel %vm1211_vm1, %v1208_v58, %v4195_v7  ;;  %v1240_v49 = vsel %vm1211_vm1, %v1207_v26, %v4198_v30  ;;  %v4209_v61 = vld [vmem:[#allocation58_spill] sm:$0xff]  ;;  %v4210_v58 = vld [vmem:[#allocation95_spill] sm:$0xff]  ;;  %v4212_v26 = vld [vmem:[#allocation104_spill] sm:$0xff] }
 0x223   : > { %v1252_v52 = vsel %vm1244_vm2, %v1219_v41, %v4196_v9  ;;  %v1274_v35 = vsel %vm1244_vm2, %v1241_v38, %v4199_v27  ;;  %v1210_v17 = vsel %vm1178_vm0, %v4210_v58, %v4209_v61  ;;  %v4211_v41 = vld [vmem:[#allocation103_spill] sm:$0xff] }
 0x224   : > { %1100 = vrot.lane.b32.xlu2 %v4182_v43, %s2069_s6  ;;  %1084 = vrot.lane.b32.xlu1 %v4183_v51, %s2069_s6  ;;  %v1285_v18 = vsel %vm1277_vm3, %v1252_v52, %v4200_v44  ;;  %v1273_v43 = vsel %vm1244_vm2, %v1240_v49, %v4201_v12  ;;  %v4202_v51 = vld [vmem:[#allocation26_spill] sm:$0xff]  ;;  %v4213_v52 = vld [vmem:[#allocation105_spill] sm:$0xff]  ;;  %v4215_v49 = vld [vmem:[#allocation127_spill] sm:$0xff] }
 0x225   : > { %938 = vrot.lane.b32.xlu0 %v4161_v28, %s2068_s5  ;;  %v1307_v8 = vsel %vm1277_vm3, %v1274_v35, %v4202_v51  ;;  %v1318_v46 = vsel %vm1310_vm4, %v1285_v18, %v3108_v40  ;;  %v1306_v21 = vsel %vm1277_vm3, %v1273_v43, %v4203_v62  ;;  %v1943_v38 = vld [vmem:[%s2147_s27 + $0xa9] sm:$0xff]  ;;  %v4217_v44 = vld [vmem:[#allocation117_spill] sm:$0xff] }
 0x226   : > { %v895_v4 = vpop.permute.xlu2 %894  ;;  %v841_v48 = vpop.permute.xlu1 %840  ;;  %v1944_v9 = vld [vmem:[%s2147_s27 + $0x49] sm:$0xff] }
 0x227   : > { %v839_v13 = vpop.permute.xlu0 %838  ;;  %v3341_v25 = vsel %vm1343_vm5, %v1315_v39, %v895_v4  ;;  %v3344_v28 = vsel %vm1310_vm4, %v1304_v45, %v841_v48  ;;  %v4204_v4 = vld [vmem:[#allocation11_spill] sm:$0xff]  ;;  %v4205_v48 = vld [vmem:[#allocation20_spill] sm:$0xff]  ;;  %v4216_v35 = vld [vmem:[#allocation30_spill] sm:$0xff] }
 0x228   : > { %v3347_v24 = vsel %vm1310_vm4, %v1303_v55, %v839_v13  ;;  %v1179_v40 = vsel %vm1178_vm0, %v196_v37, %v4204_v4  ;;  %v1189_v55 = vsel %vm1178_vm0, %v4206_v50, %v4205_v48  ;;  %v4207_v13 = vld [vmem:[#allocation39_spill] sm:$0xff]  ;;  %v4220_v50 = vld [vmem:[#allocation38_spill] sm:$0xff] }
 0x229   : > { %v1212_v22 = vsel %vm1211_vm1, %v1179_v40, %v4207_v13  ;;  %v1222_v56 = vsel %vm1211_vm1, %v1189_v55, %v4208_v0  ;;  %v1446_v13 = vld [vmem:[%s3893_s1 + $0x20] sm:$0xf] }
 0x22a   : > { %v1255_v11 = vsel %vm1244_vm2, %v1222_v56, %v4211_v41  ;;  %v1245_v7 = vsel %vm1244_vm2, %v1212_v22, %v4212_v26  ;;  %v4221_v22 = vld [vmem:[#allocation37_spill] sm:$0xff]  ;;  %1860 = vmatpush.msk.msra.mxu1 %vm1544_vm6, %v1446_v13  ;;  %1861 = vmatpush.msk.msra.mxu2 %vm1544_vm6, %v1446_v13  ;;  %v4223_v56 = vld [vmem:[#allocation43_spill] sm:$0xff]  ;;  %v4225_v41 = vld [vmem:[#allocation42_spill] sm:$0xff] }
 0x22b   : > { %v1288_v27 = vsel %vm1277_vm3, %v1255_v11, %v4215_v49  ;;  %1862 = vmatpush.msk.msra.mxu3 %vm1544_vm6, %v1446_v13  ;;  %1821 = vmatpush.msk.msra.mxu0 %vm1544_vm6, %v1446_v13  ;;  %v4226_v26 = vld [vmem:[#allocation51_spill] sm:$0xff] }
 0x22c   : > { %1118 = vrot.lane.b32.xlu2 %v4197_v33, %s2069_s6  ;;  %1036 = vrot.lane.b32.xlu1 %v1941_v34, %s2070_s7  ;;  %v1243_v33 = vsel %vm1211_vm1, %v1210_v17, %v4213_v52  ;;  %v4214_v34 = vld [vmem:[#allocation123_spill] sm:$0xff]  ;;  %v1321_v43 = vsel %vm1310_vm4, %v1288_v27, %v3130_v53  ;;  %v4228_v52 = vld [vmem:[#allocation106_spill] sm:$0xff] }
 0x22d   : > { %1020 = vrot.lane.b32.xlu0 %v1942_v59, %s2070_s7  ;;  %v1278_v30 = vsel %vm1277_vm3, %v1245_v7, %v4214_v34  ;;  %v1276_v18 = vsel %vm1244_vm2, %v1243_v33, %v4217_v44  ;;  %v4218_v59 = vld [vmem:[#allocation131_spill] sm:$0xff] }
 0x22e   : > { %v901_v36 = vpop.permute.xlu2 %900  ;;  %v847_v60 = vpop.permute.xlu1 %846  ;;  %v1311_v12 = vsel %vm1310_vm4, %v1278_v30, %v4218_v59  ;;  %v4224_v17 = vld [vmem:[#allocation7_spill] sm:$0xff]  ;;  %v1443_v59 = vld [vmem:[%s3893_s1 + $0x8] sm:$0xff] }
 0x22f   : > { %v845_v10 = vpop.permute.xlu0 %844  ;;  %v3386_v54 = vsel %vm1343_vm5, %v1318_v46, %v901_v36  ;;  %v3389_v45 = vsel %vm1310_vm4, %v1307_v8, %v847_v60  ;;  %v4219_v46 = vld [vmem:[#allocation60_spill] sm:$0xff]  ;;  %v1184_v11 = vsel %vm1178_vm0, %v4225_v41, %v4224_v17  ;;  %v4229_v49 = vld [vmem:[#allocation107_spill] sm:$0xff] }
 0x230   : > { %v3392_v39 = vsel %vm1310_vm4, %v1306_v21, %v845_v10  ;;  %v1309_v36 = vsel %vm1277_vm3, %v1276_v18, %v4219_v46  ;;  %v1945_v10 = vld [vmem:[%s2147_s27 + $0x4a] sm:$0xff] }
 0x231   : > { %v1946_v34 = vld [vmem:[%s2147_s27 + $0x171] sm:$0xff] }
 0x232   : > { %v1947_v30 = vld [vmem:[%s2147_s27 + $0x111] sm:$0xff] }
 0x233   : > { %v1948_v18 = vld [vmem:[%s2147_s27 + $0xaa] sm:$0xff] }
 0x234   : > { %1004 = vrot.lane.b32.xlu2 %v1943_v38, %s2070_s7  ;;  %988 = vrot.lane.b32.xlu1 %v1944_v9, %s2070_s7  ;;  %v4227_v38 = vld [vmem:[#allocation70_spill] sm:$0xff]  ;;  %v1949_v13 = vld [vmem:[%s2147_s27 + $0x51] sm:$0xff] }
 0x235   : > { %1134 = vrot.lane.b32.xlu0 %v4216_v35, %s2069_s6  ;;  %v1217_v9 = vsel %vm1211_vm1, %v1184_v11, %v4227_v38  ;;  %v4230_v35 = vld [vmem:[#allocation126_spill] sm:$0xff]  ;;  %v4235_v17 = vld [vmem:[#allocation55_spill] sm:$0xff]  ;;  %v4236_v11 = vld [vmem:[#allocation9_spill] sm:$0xff] }
 0x236   : > { %v907_v51 = vpop.permute.xlu2 %906  ;;  %v887_v8 = vpop.permute.xlu1 %886  ;;  %v1250_v27 = vsel %vm1244_vm2, %v1217_v9, %v4229_v49  ;;  %v4238_v38 = vld [vmem:[#allocation63_spill] sm:$0xff]  ;;  %v4241_v49 = vld [vmem:[#allocation94_spill] sm:$0xff] }
 0x237   : > { %v851_v60 = vpop.permute.xlu0 %850  ;;  %v3431_v37 = vsel %vm1343_vm5, %v1321_v43, %v907_v51  ;;  %v3434_v62 = vsel %vm1343_vm5, %v1311_v12, %v887_v8  ;;  %v4231_v12 = vld [vmem:[#allocation118_spill] sm:$0xff]  ;;  %v4232_v51 = vld [vmem:[#allocation45_spill] sm:$0xff] }
 0x238   : > { %v3437_v21 = vsel %vm1310_vm4, %v1309_v36, %v851_v60  ;;  %v1283_v43 = vsel %vm1277_vm3, %v1250_v27, %v4231_v12  ;;  %v4233_v60 = vld [vmem:[#allocation64_spill] sm:$0xff]  ;;  %v4244_v12 = vld [vmem:[#allocation122_spill] sm:$0xff] }
 0x239   : > { %v4242_v27 = vld [vmem:[#allocation112_spill] sm:$0xff] }
 0x23c   : > { %1086 = vrot.lane.b32.xlu2 %v1945_v10, %s2069_s6  ;;  %940 = vrot.lane.b32.xlu1 %v4210_v58, %s2068_s5  ;;  %v1444_v58 = vld [vmem:[%s3893_s1 + $0x10] sm:$0xff]  ;;  %v1316_v10 = vsel %vm1310_vm4, %v1283_v43, %v4233_v60 }
 0x23d   : > { %924 = vrot.lane.b32.xlu0 %v4166_v29, %s2068_s5  ;;  %v4222_v29 = vld [vmem:[#allocation18_spill] sm:$0xff] }
 0x23e   : > { %v913_v53 = vpop.permute.xlu2 %912  ;;  %v893_v4 = vpop.permute.xlu1 %892  ;;  %v1185_v61 = vsel %vm1178_vm0, %v4223_v56, %v4222_v29 }
 0x23f   : > { %v891_v40 = vpop.permute.xlu0 %890  ;;  %v3447_v48 = vsel %vm1343_vm5, %v3175_v3, %v913_v53  ;;  %v3451_v55 = vsel %vm1343_vm5, %v4220_v50, %v893_v4  ;;  %v1445_v3 = vld [vmem:[%s3893_s1 + $0x18] sm:$0xff]  ;;  %v1218_v7 = vsel %vm1211_vm1, %v1185_v61, %v4226_v26  ;;  %v4237_v26 = vld [vmem:[#allocation54_spill] sm:$0xff] }
 0x240   : > { %v3458_v0 = vsel %vm1343_vm5, %v4221_v22, %v891_v40  ;;  %1863 = vmatpush.msra.mxu1 %v1445_v3  ;;  %1864 = vmatpush.msra.mxu2 %v1445_v3  ;;  %v1251_v33 = vsel %vm1244_vm2, %v1218_v7, %v4228_v52  ;;  %v1442_v40 = vld [vmem:[%s3893_s1] sm:$0xff]  ;;  %v1950_v22 = vld [vmem:[%s2147_s27 + $0x172] sm:$0xff]  ;;  %v1190_v7 = vsel %vm1178_vm0, %v4237_v26, %v4236_v11  ;;  %v4239_v52 = vld [vmem:[#allocation82_spill] sm:$0xff] }
 0x241   : > { %1865 = vmatpush.msra.mxu3 %v1445_v3  ;;  %1560 = vmatpush.msra.mxu0 %v1445_v3  ;;  %v1284_v44 = vsel %vm1277_vm3, %v1251_v33, %v4230_v35  ;;  %v1951_v3 = vld [vmem:[%s2147_s27 + $0x112] sm:$0xff]  ;;  %v1223_v33 = vsel %vm1211_vm1, %v1190_v7, %v4239_v52  ;;  %v1956_v26 = vld [vmem:[%s2147_s27 + $0x60] sm:$0xff] }
 0x242   : > { %1866 = vmatpush.msra.mxu1 %v1444_v58  ;;  %v1317_v8 = vsel %vm1310_vm4, %v1284_v44, %v4232_v51  ;;  %1867 = vmatpush.msra.mxu2 %v1444_v58  ;;  %v1256_v35 = vsel %vm1244_vm2, %v1223_v33, %v4242_v27  ;;  %v4243_v44 = vld [vmem:[#allocation130_spill] sm:$0xff]  ;;  %v4247_v7 = vld [vmem:[#allocation8_spill] sm:$0xff] }
 0x243   : > { %1868 = vmatpush.msra.mxu3 %v1444_v58  ;;  %1561 = vmatpush.msra.mxu0 %v1444_v58  ;;  %v4234_v58 = vld [vmem:[#allocation25_spill] sm:$0xff]  ;;  %v1289_v43 = vsel %vm1277_vm3, %v1256_v35, %v4244_v12  ;;  %v4245_v51 = vld [vmem:[#allocation62_spill] sm:$0xff]  ;;  %v4248_v52 = vld [vmem:[#allocation76_spill] sm:$0xff] }
 0x244   : > { %1038 = vrot.lane.b32.xlu2 %v1946_v34, %s2070_s7  ;;  %1022 = vrot.lane.b32.xlu1 %v1947_v30, %s2070_s7  ;;  %v1191_v41 = vsel %vm1178_vm0, %v4235_v17, %v4234_v58  ;;  %v4240_v34 = vld [vmem:[#allocation111_spill] sm:$0xff] }
 0x245   : > { %1102 = vrot.lane.b32.xlu0 %v1948_v18, %s2069_s6  ;;  %1869 = vmatpush.msra.mxu1 %v1443_v59  ;;  %v1224_v9 = vsel %vm1211_vm1, %v1191_v41, %v4238_v38  ;;  %v4246_v41 = vld [vmem:[#allocation66_spill] sm:$0xff]  ;;  %v1187_v38 = vsel %vm1178_vm0, %v1956_v26, %v4247_v7 }
 0x246   : > { %v3495_v46 = vpop.permute.xlu2 %918  ;;  %v899_v36 = vpop.permute.xlu1 %898  ;;  %1870 = vmatpush.msra.mxu2 %v1443_v59  ;;  %1871 = vmatpush.msra.mxu3 %v1443_v59  ;;  %v1257_v30 = vsel %vm1244_vm2, %v1224_v9, %v4240_v34  ;;  %v1220_v33 = vsel %vm1211_vm1, %v1187_v38, %v4248_v52  ;;  %v4249_v34 = vld [vmem:[#allocation109_spill] sm:$0xff]  ;;  %v1962_v7 = vld [vmem:[%s2147_s27 + $0x68] sm:$0xff] }
 0x247   : > { %v897_v53 = vpop.permute.xlu0 %896  ;;  %v3500_v4 = vsel %vm1343_vm5, %v1317_v8, %v899_v36  ;;  %1872 = vmatpush.msra.mxu1 %v1442_v40  ;;  %1562 = vmatpush.msra.mxu0 %v1443_v59  ;;  %v1290_v18 = vsel %vm1277_vm3, %v1257_v30, %v4243_v44  ;;  %v1952_v59 = vld [vmem:[%s2147_s27 + $0xb1] sm:$0xff]  ;;  %v1253_v30 = vsel %vm1244_vm2, %v1220_v33, %v4249_v34  ;;  %v4254_v38 = vld [vmem:[#allocation21_spill] sm:$0xff] }
 0x248   : > { %v3506_v50 = vsel %vm1343_vm5, %v1316_v10, %v897_v53  ;;  %1873 = vmatpush.msra.mxu2 %v1442_v40  ;;  %1874 = vmatpush.msra.mxu3 %v1442_v40  ;;  %v1323_v8 = vsel %vm1310_vm4, %v1290_v18, %v4245_v51  ;;  %v4251_v44 = vld [vmem:[#allocation32_spill] sm:$0xff]  ;;  %v1188_v52 = vsel %vm1178_vm0, %v1962_v7, %v4254_v38  ;;  %v4255_v34 = vld [vmem:[#allocation57_spill] sm:$0xff] }
 0x249   : > { %1563 = vmatpush.msra.mxu0 %v1442_v40 }
 0x24c   : > { %990 = vrot.lane.b32.xlu2 %v1949_v13, %s2070_s7  ;;  %1136 = vrot.lane.b32.xlu1 %v1950_v22, %s2069_s6  ;;  %v1953_v13 = vld [vmem:[%s2147_s27 + $0x121] sm:$0xff]  ;;  %v1954_v22 = vld [vmem:[%s2147_s27 + $0xb2] sm:$0xff] }
 0x24d   : > { %1120 = vrot.lane.b32.xlu0 %v1951_v3, %s2069_s6  ;;  %v1955_v3 = vld [vmem:[%s2147_s27 + $0x52] sm:$0xff] }
 0x24e   : > { %v3514_v29 = vpop.permute.xlu2 %934  ;;  %v3516_v56 = vpop.permute.xlu1 %904 }
 0x24f   : > { %v903_v61 = vpop.permute.xlu0 %902 }
 0x254   : > { %942 = vrot.lane.b32.xlu2 %v4241_v49, %s2068_s5  ;;  %926 = vrot.lane.b32.xlu1 %v4148_v32, %s2068_s5  ;;  %v1322_v32 = vsel %vm1310_vm4, %v1289_v43, %v3128_v42  ;;  %v4250_v49 = vld [vmem:[#allocation120_spill] sm:$0xff] }
 0x255   : > { %1006 = vrot.lane.b32.xlu0 %v1952_v59, %s2070_s7  ;;  %v1286_v27 = vsel %vm1277_vm3, %v1253_v30, %v4250_v49  ;;  %v4252_v59 = vld [vmem:[#allocation116_spill] sm:$0xff]  ;;  %v1221_v30 = vsel %vm1211_vm1, %v1188_v52, %v4255_v34 }
 0x256   : > { %v1115_v36 = vpop.permute.xlu2 %1114  ;;  %v911_v60 = vpop.permute.xlu1 %910  ;;  %v1319_v35 = vsel %vm1310_vm4, %v1286_v27, %v3106_v20  ;;  %v4256_v49 = vld [vmem:[#allocation108_spill] sm:$0xff] }
 0x257   : > { %v909_v10 = vpop.permute.xlu0 %908  ;;  %v3547_v53 = vsel %vm1343_vm5, %v1323_v8, %v911_v60  ;;  %v1352_v18 = vsel %vm1343_vm5, %v1319_v35, %v903_v61  ;;  %v1958_v61 = vld [vmem:[%s2147_s27 + $0xc1] sm:$0xff]  ;;  %v1969_v34 = vld [vmem:[%s2147_s27 + $0x139] sm:$0xff] }
 0x258   : > { %v3550_v40 = vsel %vm1343_vm5, %v1322_v32, %v909_v10  ;;  %v1959_v60 = vld [vmem:[%s2147_s27 + $0x61] sm:$0xff] }
 0x259   : > { %v4258_v35 = vld [vmem:[#allocation49_spill] sm:$0xff] }
 0x25c   : > { %1024 = vrot.lane.b32.xlu2 %v1953_v13, %s2070_s7  ;;  %1104 = vrot.lane.b32.xlu1 %v1954_v22, %s2069_s6  ;;  %v1360_v13 = vsel %vm1343_vm5, %v3217_v16, %v3495_v46  ;;  %v1368_v16 = vsel %vm1343_vm5, %v3169_v15, %v3514_v29  ;;  %v1254_v15 = vsel %vm1244_vm2, %v1221_v30, %v4256_v49  ;;  %v4257_v29 = vld [vmem:[#allocation128_spill] sm:$0xff] }
 0x25d   : > { %1088 = vrot.lane.b32.xlu0 %v1955_v3, %s2069_s6  ;;  %v1287_v27 = vsel %vm1277_vm3, %v1254_v15, %v4257_v29 }
 0x25e   : > { %v1001_v58 = vpop.permute.xlu2 %1000  ;;  %v917_v17 = vpop.permute.xlu1 %916 }
 0x25f   : > { %v915_v42 = vpop.permute.xlu0 %914  ;;  %v3560_v11 = vsel %vm1343_vm5, %v4246_v41, %v917_v17  ;;  %v1385_v12 = vsel %vm1376_vm7, %v1352_v18, %v1001_v58  ;;  %v1961_v17 = vld [vmem:[%s2147_s27 + $0x62] sm:$0xff]  ;;  %v4259_v18 = vld [vmem:[#allocation115_spill] sm:$0xff] }
 0x260   : > { %v3567_v9 = vsel %vm1343_vm5, %v3172_v57, %v915_v42  ;;  %v1957_v57 = vld [vmem:[%s2147_s27 + $0x122] sm:$0xff] }
 0x261   : > { %v4253_v42 = vld [vmem:[#allocation93_spill] sm:$0xff] }
 0x264   : > { %1138 = vrot.lane.b32.xlu2 %v4251_v44, %s2069_s6  ;;  %1122 = vrot.lane.b32.xlu1 %v1957_v57, %s2069_s6  ;;  %v1320_v44 = vsel %vm1310_vm4, %v1287_v27, %v4258_v35  ;;  %v1963_v57 = vld [vmem:[%s2147_s27 + $0x12a] sm:$0xff]  ;;  %v302_v35 = vld [vmem:[%s2147_s27 + $0x19a] sm:$0xff] }
 0x265   : > { %1040 = vrot.lane.b32.xlu0 %v4252_v59, %s2070_s7  ;;  %v1353_v59 = vsel %vm1343_vm5, %v1320_v44, %v3516_v56  ;;  %v1965_v56 = vld [vmem:[%s2147_s27 + $0xc9] sm:$0xff]  ;;  %v1971_v44 = vld [vmem:[%s2147_s27 + $0x79] sm:$0xff] }
 0x266   : > { %v1099_v43 = vpop.permute.xlu2 %1098  ;;  %v3585_v51 = vpop.permute.xlu1 %922 }
 0x267   : > { %v921_v20 = vpop.permute.xlu0 %920  ;;  %v1418_v8 = vsel %vm1409_vm8, %v1385_v12, %v1099_v43  ;;  %v1964_v12 = vld [vmem:[%s2147_s27 + $0x129] sm:$0xff] }
 0x268   : > { %1830 = vmatmul.msk.f32.vlgmr.msra.gmra.mxu1 %vm1447_vm9, %v1418_v8 }
 0x26c   : > { %928 = vrot.lane.b32.xlu2 %v4179_v63, %s2068_s5  ;;  %1008 = vrot.lane.b32.xlu1 %v1958_v61, %s2070_s7  ;;  %v1960_v63 = vld [vmem:[%s2147_s27 + $0xc2] sm:$0xff] }
 0x26d   : > { %992 = vrot.lane.b32.xlu0 %v1959_v60, %s2070_s7 }
 0x26e   : > { %v1117_v32 = vpop.permute.xlu2 %1116  ;;  %v1033_v10 = vpop.permute.xlu1 %1032 }
 0x26f   : > { %v1017_v22 = vpop.permute.xlu0 %1016 }
 0x270   : > { %v1393_v3 = vsel %vm1376_vm7, %v1360_v13, %v1017_v22 }
 0x271   : > { %v1426_v58 = vsel %vm1409_vm8, %v1393_v3, %v1115_v36  ;;  %v1401_v36 = vsel %vm1376_vm7, %v1368_v16, %v1033_v10  ;;  %v1966_v3 = vld [vmem:[%s2147_s27 + $0x69] sm:$0xff] }
 0x272   : > { %1838 = vmatmul.msk.f32.vlgmr.msra.gmra.mxu2 %vm1447_vm9, %v1426_v58 }
 0x274   : > { %1106 = vrot.lane.b32.xlu2 %v1960_v63, %s2069_s6  ;;  %1090 = vrot.lane.b32.xlu1 %v1961_v17, %s2069_s6  ;;  %v1361_v17 = vsel %vm1343_vm5, %v3214_v14, %v921_v20 }
 0x275   : > { %944 = vrot.lane.b32.xlu0 %v4253_v42, %s2068_s5 }
 0x276   : > { %v1003_v46 = vpop.permute.xlu2 %1002  ;;  %v985_v41 = vpop.permute.xlu1 %984 }
 0x277   : > { %v1131_v26 = vpop.permute.xlu0 %1130  ;;  %v1386_v43 = vsel %vm1376_vm7, %v1353_v59, %v1003_v46  ;;  %v1377_v8 = vsel %vm1376_vm7, %v3434_v62, %v985_v41  ;;  %v4260_v62 = vld [vmem:[#allocation36_spill] sm:$0xff] }
 0x278   : > { %v1434_v33 = vsel %vm1409_vm8, %v1401_v36, %v1131_v26  ;;  %v230_v41 = vld [vmem:[%s2147_s27 + $0x198] sm:$0xff]  ;;  %v1967_v36 = vld [vmem:[%s2147_s27 + $0x6a] sm:$0xff] }
 0x279   : > { %1846 = vmatmul.msk.f32.vlgmr.msra.gmra.mxu3 %vm1447_vm9, %v1434_v33  ;;  %v1968_v26 = vld [vmem:[%s2147_s27 + $0x138] sm:$0xff] }
 0x27a   : > { %v266_v33 = vld [vmem:[%s2147_s27 + $0x199] sm:$0xff] }
 0x27b   : > { %v4261_v59 = vld [vmem:[#allocation68_spill] sm:$0xff] }
 0x27c   : > { %1124 = vrot.lane.b32.xlu2 %v1963_v57, %s2069_s6  ;;  %1042 = vrot.lane.b32.xlu1 %v4259_v18, %s2070_s7  ;;  %v1972_v57 = vld [vmem:[%s2147_s27 + $0x13a] sm:$0xff] }
 0x27d   : > { %1026 = vrot.lane.b32.xlu0 %v1964_v12, %s2070_s7  ;;  %v1362_v12 = vsel %vm1343_vm5, %v4261_v59, %v3585_v51 }
 0x27e   : > { %v1101_v61 = vpop.permute.xlu2 %1100  ;;  %v1083_v60 = vpop.permute.xlu1 %1082 }
 0x27f   : > { %v937_v10 = vpop.permute.xlu0 %936  ;;  %v1410_v13 = vsel %vm1409_vm8, %v1377_v8, %v1083_v60  ;;  %v1419_v22 = vsel %vm1409_vm8, %v1386_v43, %v1101_v61  ;;  %v231_v60 = vld [vmem:[%s2147_s27 + $0x1a0] sm:$0xff] }
 0x280   : > { %1822 = vmatmul.msk.f32.vlgmr.msra.gmra.mxu0 %vm1447_vm9, %v1410_v13  ;;  %1831 = vmatmul.msk.f32.gmra.mxu1 %vm1447_vm9, %v1419_v22  ;;  %v1369_v14 = vsel %vm1343_vm5, %v3347_v24, %v937_v10  ;;  %v1970_v24 = vld [vmem:[%s2147_s27 + $0xca] sm:$0xff]  ;;  %v1973_v10 = vld [vmem:[%s2147_s27 + $0x140] sm:$0xff] }
 0x281   : > { %v1974_v13 = vld [vmem:[%s2147_s27 + $0xd9] sm:$0xff] }
 0x284   : > { %1010 = vrot.lane.b32.xlu2 %v1965_v56, %s2070_s7  ;;  %994 = vrot.lane.b32.xlu1 %v1966_v3, %s2070_s7 }
 0x285   : > { %1140 = vrot.lane.b32.xlu0 %v4260_v62, %s2069_s6 }
 0x286   : > { %v1119_v58 = vpop.permute.xlu2 %1118  ;;  %v1035_v63 = vpop.permute.xlu1 %1034 }
 0x287   : > { %v1019_v42 = vpop.permute.xlu0 %1018 }
 0x288   : > { %v1394_v16 = vsel %vm1376_vm7, %v1361_v17, %v1019_v42  ;;  %v1976_v42 = vld [vmem:[%s2147_s27 + $0x141] sm:$0xff] }
 0x289   : > { %v1427_v46 = vsel %vm1409_vm8, %v1394_v16, %v1117_v32  ;;  %v1402_v32 = vsel %vm1376_vm7, %v1369_v14, %v1035_v63  ;;  %v1977_v16 = vld [vmem:[%s2147_s27 + $0x7a] sm:$0xff]  ;;  %v1978_v14 = vld [vmem:[%s2147_s27 + $0x142] sm:$0xff] }
 0x28a   : > { %1839 = vmatmul.msk.f32.gmra.mxu2 %vm1447_vm9, %v1427_v46 }
 0x28c   : > { %1092 = vrot.lane.b32.xlu2 %v1967_v36, %s2069_s6  ;;  %946 = vrot.lane.b32.xlu1 %v230_v41, %s2068_s5  ;;  %v303_v36 = vld [vmem:[%s2147_s27 + $0x1a2] sm:$0xff] }
 0x28d   : > { %930 = vrot.lane.b32.xlu0 %v1968_v26, %s2068_s5  ;;  %v267_v26 = vld [vmem:[%s2147_s27 + $0x1a1] sm:$0xff] }
 0x28e   : > { %v3658_v20 = vpop.permute.xlu2 %1004  ;;  %v987_v7 = vpop.permute.xlu1 %986 }
 0x28f   : > { %v1133_v38 = vpop.permute.xlu0 %1132  ;;  %v1378_v30 = vsel %vm1376_vm7, %v3297_v47, %v987_v7 }
 0x290   : > { %v1435_v52 = vsel %vm1409_vm8, %v1402_v32, %v1133_v38  ;;  %v1387_v32 = vsel %vm1376_vm7, %v3431_v37, %v3658_v20 }
 0x291   : > { %1847 = vmatmul.msk.f32.gmra.mxu3 %vm1447_vm9, %v1435_v52 }
 0x294   : > { %1044 = vrot.lane.b32.xlu2 %v266_v33, %s2070_s7  ;;  %1028 = vrot.lane.b32.xlu1 %v1969_v34, %s2070_s7 }
 0x295   : > { %1108 = vrot.lane.b32.xlu0 %v1970_v24, %s2069_s6  ;;  %v1979_v24 = vld [vmem:[%s2147_s27 + $0xe1] sm:$0xff] }
 0x296   : > { %v1087_v49 = vpop.permute.xlu2 %1086  ;;  %v1085_v15 = vpop.permute.xlu1 %1084 }
 0x297   : > { %v939_v29 = vpop.permute.xlu0 %938  ;;  %v1411_v27 = vsel %vm1409_vm8, %v1378_v30, %v1085_v15  ;;  %v1980_v30 = vld [vmem:[%s2147_s27 + $0x82] sm:$0xff] }
 0x298   : > { %1823 = vmatmul.msk.f32.gmra.mxu0 %vm1447_vm9, %v1411_v27  ;;  %v1370_v51 = vsel %vm1343_vm5, %v3344_v28, %v939_v29  ;;  %v1975_v28 = vld [vmem:[%s2147_s27 + $0xda] sm:$0xff] }
 0x29c   : > { %996 = vrot.lane.b32.xlu2 %v1971_v44, %s2070_s7  ;;  %1142 = vrot.lane.b32.xlu1 %v302_v35, %s2069_s6 }
 0x29d   : > { %1126 = vrot.lane.b32.xlu0 %v1972_v57, %s2069_s6  ;;  %v1982_v57 = vld [vmem:[%s2147_s27 + $0xe2] sm:$0xff] }
 0x29e   : > { %v1039_v47 = vpop.permute.xlu2 %1038  ;;  %v1037_v18 = vpop.permute.xlu1 %1036 }
 0x29f   : > { %v1021_v43 = vpop.permute.xlu0 %1020  ;;  %v1403_v3 = vsel %vm1376_vm7, %v1370_v51, %v1037_v18 }
 0x2a0   : > { %v1395_v8 = vsel %vm1376_vm7, %v1362_v12, %v1021_v43 }
 0x2a1   : > { %v1428_v61 = vsel %vm1409_vm8, %v1395_v8, %v1119_v58 }
 0x2a2   : > { %1840 = vmatmul.msk.f32.gmra.mxu2 %vm1447_vm9, %v1428_v61 }
 0x2a4   : > { %948 = vrot.lane.b32.xlu2 %v231_v60, %s2068_s5  ;;  %932 = vrot.lane.b32.xlu1 %v1973_v10, %s2068_s5 }
 0x2a5   : > { %1012 = vrot.lane.b32.xlu0 %v1974_v13, %s2070_s7 }
 0x2a6   : > { %v991_v22 = vpop.permute.xlu2 %990  ;;  %v989_v56 = vpop.permute.xlu1 %988 }
 0x2a7   : > { %v1135_v62 = vpop.permute.xlu0 %1134  ;;  %v1379_v58 = vsel %vm1376_vm7, %v3458_v0, %v989_v56  ;;  %v1380_v43 = vsel %vm1376_vm7, %v3451_v55, %v991_v22 }
 0x2a8   : > { %v1436_v63 = vsel %vm1409_vm8, %v1403_v3, %v1135_v62  ;;  %v1412_v17 = vsel %vm1409_vm8, %v1379_v58, %v1087_v49  ;;  %v1981_v49 = vld [vmem:[%s2147_s27 + $0x81] sm:$0xff]  ;;  %s180_s27 = sand.u32 1, %s2045_s10  }
 0x2a9   : > { %1848 = vmatmul.msk.f32.gmra.mxu3 %vm1447_vm9, %v1436_v63  ;;  %1824 = vmatmul.msk.f32.gmra.mxu0 %vm1447_vm9, %v1412_v17  ;;  %s1819_s30 = sshll.u32 %s180_s27, 8  ;;  %s1694_s16 = scalar_lea.sflag [#allocation3], %s180_s27 }
 0x2aa   : > { %s3762_s3 = scalar_lea.vmem [#allocation2], %s1819_s30 }
 0x2ab   : > { %s1709_s8 = sshll.u32 %s3762_s3, 4  ;;  %s1710_s8 = int_to_ptr.vmem [resolvable:$true] %s1709_s8 }
 0x2ac   : > { %1110 = vrot.lane.b32.xlu1 %v1975_v28, %s2069_s6  ;;  %1030 = vrot.lane.b32.xlu2 %v1976_v42, %s2070_s7 }
 0x2ad   : > { %1094 = vrot.lane.b32.xlu0 %v1977_v16, %s2069_s6 }
 0x2ae   : > { %v941_v46 = vpop.permute.xlu1 %940  ;;  %v943_v41 = vpop.permute.xlu2 %942 }
 0x2af   : > { %v925_v0 = vpop.permute.xlu0 %924  ;;  %v1371_v34 = vsel %vm1343_vm5, %v3211_v6, %v941_v46  ;;  %v1372_v55 = vsel %vm1343_vm5, %v3392_v39, %v943_v41 }
 0x2b0   : > { %v1363_v37 = vsel %vm1343_vm5, %v3260_v19, %v925_v0  ;;  %v1404_v15 = vsel %vm1376_vm7, %v1371_v34, %v1039_v47 }
 0x2b4   : > { %1128 = vrot.lane.b32.xlu1 %v1978_v14, %s2069_s6  ;;  %1144 = vrot.lane.b32.xlu2 %v303_v36, %s2069_s6 }
 0x2b5   : > { %1046 = vrot.lane.b32.xlu0 %v267_v26, %s2070_s7 }
 0x2b6   : > { %v1023_v7 = vpop.permute.xlu1 %1022  ;;  %v1025_v33 = vpop.permute.xlu2 %1024 }
 0x2b7   : > { %v1103_v38 = vpop.permute.xlu0 %1102  ;;  %v1396_v29 = vsel %vm1376_vm7, %v1363_v37, %v1023_v7 }
 0x2b8   : > { %v1420_v52 = vsel %vm1409_vm8, %v1387_v32, %v1103_v38 }
 0x2b9   : > { %1832 = vmatmul.msk.f32.gmra.mxu1 %vm1447_vm9, %v1420_v52 }
 0x2bc   : > { %1014 = vrot.lane.b32.xlu1 %v1979_v24, %s2070_s7  ;;  %1096 = vrot.lane.b32.xlu2 %v1980_v30, %s2069_s6 }
 0x2bd   : > { %998 = vrot.lane.b32.xlu0 %v1981_v49, %s2070_s7  ;;  %s1708_s7 = scalar_lea.hbm %s3894_s2, %s1859_s4 }
 0x2be   : > { %v1137_v20 = vpop.permute.xlu1 %1136  ;;  %v1139_v44 = vpop.permute.xlu2 %1138  ;;  %s1711_s15 = sshll.u32 %s1708_s7, 4  ;;  %s1712_s15 = int_to_ptr.hbm [resolvable:$true] %s1711_s15 }
 0x2bf   : > { %v1121_v27 = vpop.permute.xlu0 %1120  ;;  %v1437_v6 = vsel %vm1409_vm8, %v1404_v15, %v1137_v20  ;;  %s1997_s18 = sshra.s32 %s1712_s15, 4  ;;  %s1998_s18 = int_to_ptr.hbm [resolvable:$true] %s1997_s18 }
 0x2c0   : > { %v1429_v35 = vsel %vm1409_vm8, %v1396_v29, %v1121_v27  ;;  %1849 = vmatmul.msk.f32.gmra.mxu3 %vm1447_vm9, %v1437_v6  ;;  %s1999_s12 = scalar_lea.hbm %s1998_s18, 256  ;;  %p2004_p1 = scmp.lt.s32.totalorder %s1998_s18, %s3894_s2 }
 0x2c1   : > { %1841 = vmatmul.msk.f32.gmra.mxu2 %vm1447_vm9, %v1429_v35  ;;  %p2000_p12 = scmp.ne.s32.totalorder %s1998_s18, %s1999_s12  ;;  %p2005_p2 = scmp.lt.s32.totalorder %s2003_s24, %s1999_s12 }
 0x2c3   : > { %p2001_p13 = pnand %p2000_p12, %p2127_p4  ;;  %p2006_p3 = por %p2005_p2, %p2004_p1 }
 0x2c5   : > { %1112 = vrot.lane.b32.xlu0 %v1982_v57, %s2069_s6  ;;  %p2002_p0 = pneg %p2001_p13 }
 0x2c6   : > { %v927_v18 = vpop.permute.xlu1 %926  ;;  %v929_v59 = vpop.permute.xlu2 %928 }
 0x2c7   : > { %v1007_v19 = vpop.permute.xlu0 %1006  ;;  %v1364_v10 = vsel %vm1343_vm5, %v3257_v23, %v927_v18  ;;  %v1365_v36 = vsel %vm1343_vm5, %v3133_v2, %v929_v59  ;;  %p2007_p5 = pnand %p2006_p3, %p2002_p0 }
 0x2c8   : > { %v1388_v47 = vsel %vm1376_vm7, %v3550_v40, %v1007_v19  ;;  %v1397_v13 = vsel %vm1376_vm7, %v1364_v10, %v1025_v33 }
 0x2ce   : > { %v1105_v12 = vpop.permute.xlu1 %1104  ;;  %v1107_v56 = vpop.permute.xlu2 %1106 }
 0x2cf   : > { %v1089_v8 = vpop.permute.xlu0 %1088  ;;  %v1421_v61 = vsel %vm1409_vm8, %v1388_v47, %v1105_v12 }
 0x2d0   : > { %v1413_v60 = vsel %vm1409_vm8, %v1380_v43, %v1089_v8  ;;  %1833 = vmatmul.msk.f32.gmra.mxu1 %vm1447_vm9, %v1421_v61 }
 0x2d1   : > { %1825 = vmatmul.msk.f32.gmra.mxu0 %vm1447_vm9, %v1413_v60 }
 0x2d6   : > { %v1123_v40 = vpop.permute.xlu1 %1122  ;;  %v1125_v17 = vpop.permute.xlu2 %1124 }
 0x2d7   : > { %v1041_v51 = vpop.permute.xlu0 %1040  ;;  %v1430_v22 = vsel %vm1409_vm8, %v1397_v13, %v1123_v40 }
 0x2d8   : > { %v1405_v3 = vsel %vm1376_vm7, %v1372_v55, %v1041_v51  ;;  %1842 = vmatmul.msk.f32.gmra.mxu2 %vm1447_vm9, %v1430_v22 }
 0x2d9   : > { %v1438_v62 = vsel %vm1409_vm8, %v1405_v3, %v1139_v44 }
 0x2da   : > { %1850 = vmatmul.msk.f32.gmra.mxu3 %vm1447_vm9, %v1438_v62 }
 0x2de   : > { %v1009_v23 = vpop.permute.xlu1 %1008  ;;  %v1011_v0 = vpop.permute.xlu2 %1010 }
 0x2df   : > { %v993_v58 = vpop.permute.xlu0 %992  ;;  %v1389_v63 = vsel %vm1376_vm7, %v3547_v53, %v1009_v23 }
 0x2e0   : > { %v1422_v39 = vsel %vm1409_vm8, %v1389_v63, %v1107_v56  ;;  %v1381_v42 = vsel %vm1376_vm7, %v3341_v25, %v993_v58 }
 0x2e1   : > { %1834 = vmatmul.msk.f32.gmra.mxu1 %vm1447_vm9, %v1422_v39 }
 0x2e5   : > { %v1589_v28 = vpop.f32.mrf.mxu1 }
 0x2e6   : > { %1669 = vst [vmem:[%s3762_s3 + $0x40] sm:$0xff] %v1589_v28  ;;  %v1091_v16 = vpop.permute.xlu1 %1090  ;;  %v1093_v38 = vpop.permute.xlu2 %1092 }
 0x2e7   : > { %v945_v46 = vpop.permute.xlu0 %944  ;;  %v1414_v53 = vsel %vm1409_vm8, %v1381_v42, %v1091_v16 }
 0x2e8   : > { %1826 = vmatmul.msk.f32.gmra.mxu0 %vm1447_vm9, %v1414_v53  ;;  %v1373_v32 = vsel %vm1343_vm5, %v3389_v45, %v945_v46 }
 0x2ee   : > { %v1043_v41 = vpop.permute.xlu1 %1042  ;;  %v1045_v29 = vpop.permute.xlu2 %1044 }
 0x2ef   : > { %v1027_v26 = vpop.permute.xlu0 %1026  ;;  %v1406_v33 = vsel %vm1376_vm7, %v1373_v32, %v1043_v41 }
 0x2f0   : > { %v1398_v14 = vsel %vm1376_vm7, %v1365_v36, %v1027_v26 }
 0x2f1   : > { %v1431_v25 = vsel %vm1409_vm8, %v1398_v14, %v1125_v17 }
 0x2f2   : > { %1843 = vmatmul.msk.f32.gmra.mxu2 %vm1447_vm9, %v1431_v25 }
 0x2f5   : > { %v1613_v7 = vpop.f32.mrf.mxu2 }
 0x2f6   : > { %1677 = vst [vmem:[%s3762_s3 + $0x80] sm:$0xff] %v1613_v7  ;;  %v995_v52 = vpop.permute.xlu1 %994  ;;  %v997_v44 = vpop.permute.xlu2 %996 }
 0x2f7   : > { %v1141_v2 = vpop.permute.xlu0 %1140  ;;  %v1382_v34 = vsel %vm1376_vm7, %v3506_v50, %v995_v52  ;;  %v1390_v50 = vsel %vm1376_vm7, %v3447_v48, %v1011_v0  ;;  %v1383_v51 = vsel %vm1376_vm7, %v3500_v4, %v997_v44 }
 0x2f8   : > { %v1439_v24 = vsel %vm1409_vm8, %v1406_v33, %v1141_v2  ;;  %v1415_v30 = vsel %vm1409_vm8, %v1382_v34, %v1093_v38 }
 0x2f9   : > { %1851 = vmatmul.msk.f32.gmra.mxu3 %vm1447_vm9, %v1439_v24  ;;  %1827 = vmatmul.msk.f32.gmra.mxu0 %vm1447_vm9, %v1415_v30 }
 0x2fc   : > { %v1637_v49 = vpop.f32.mrf.mxu3 }
 0x2fd   : > { %1685 = vst [vmem:[%s3762_s3 + $0xc0] sm:$0xff] %v1637_v49  ;;  %v1565_v45 = vpop.f32.mrf.mxu0  ;;  %v1592_v37 = vpop.f32.mrf.mxu1 }
 0x2fe   : > { %1661 = vst [vmem:[%s3762_s3] sm:$0xff] %v1565_v45  ;;  %v947_v20 = vpop.permute.xlu1 %946 }
 0x2ff   : > { %1670 = vst [vmem:[%s3762_s3 + $0x48] sm:$0xff] %v1592_v37  ;;  %v931_v15 = vpop.permute.xlu0 %930  ;;  %v1374_v57 = vsel %vm1343_vm5, %v3254_v31, %v947_v20  ;;  %v949_v31 = vpop.permute.xlu2 %948 }
 0x300   : > { %v1366_v19 = vsel %vm1343_vm5, %v3303_v1, %v931_v15  ;;  %v1407_v59 = vsel %vm1376_vm7, %v1374_v57, %v1045_v29  ;;  %v1375_v39 = vsel %vm1343_vm5, %v3437_v21, %v949_v31 }
 0x306   : > { %v1029_v27 = vpop.permute.xlu1 %1028 }
 0x307   : > { %v1109_v6 = vpop.permute.xlu0 %1108  ;;  %v1399_v48 = vsel %vm1376_vm7, %v1366_v19, %v1029_v27  ;;  %v1031_v40 = vpop.permute.xlu2 %1030 }
 0x308   : > { %v1423_v35 = vsel %vm1409_vm8, %v1390_v50, %v1109_v6 }
 0x309   : > { %1835 = vmatmul.msk.f32.gmra.mxu1 %vm1447_vm9, %v1423_v35 }
 0x30d   : > { %v1616_v18 = vpop.f32.mrf.mxu2 }
 0x30e   : > { %1678 = vst [vmem:[%s3762_s3 + $0x88] sm:$0xff] %v1616_v18  ;;  %v1143_v47 = vpop.permute.xlu1 %1142 }
 0x30f   : > { %v1127_v12 = vpop.permute.xlu0 %1126  ;;  %v1440_v43 = vsel %vm1409_vm8, %v1407_v59, %v1143_v47  ;;  %v1145_v23 = vpop.permute.xlu2 %1144 }
 0x310   : > { %v1432_v8 = vsel %vm1409_vm8, %v1399_v48, %v1127_v12  ;;  %1852 = vmatmul.msk.f32.gmra.mxu3 %vm1447_vm9, %v1440_v43 }
 0x311   : > { %1844 = vmatmul.msk.f32.gmra.mxu2 %vm1447_vm9, %v1432_v8 }
 0x314   : > { %v1640_v61 = vpop.f32.mrf.mxu3 }
 0x315   : > { %1686 = vst [vmem:[%s3762_s3 + $0xc8] sm:$0xff] %v1640_v61  ;;  %v1568_v60 = vpop.f32.mrf.mxu0 }
 0x316   : > { %1662 = vst [vmem:[%s3762_s3 + $0x8] sm:$0xff] %v1568_v60  ;;  %v933_v1 = vpop.permute.xlu1 %932 }
 0x317   : > { %v1013_v10 = vpop.permute.xlu0 %1012  ;;  %v1367_v62 = vsel %vm1343_vm5, %v3300_v5, %v933_v1  ;;  %v1097_v46 = vpop.permute.xlu2 %1096 }
 0x318   : > { %v1391_v13 = vsel %vm1376_vm7, %v3567_v9, %v1013_v10  ;;  %v1400_v58 = vsel %vm1376_vm7, %v1367_v62, %v1031_v40 }
 0x31e   : > { %v1111_v55 = vpop.permute.xlu1 %1110 }
 0x31f   : > { %v1095_v22 = vpop.permute.xlu0 %1094  ;;  %v1424_v56 = vsel %vm1409_vm8, %v1391_v13, %v1111_v55 }
 0x320   : > { %v1416_v3 = vsel %vm1409_vm8, %v1383_v51, %v1095_v22  ;;  %1836 = vmatmul.msk.f32.gmra.mxu1 %vm1447_vm9, %v1424_v56 }
 0x321   : > { %1828 = vmatmul.msk.f32.gmra.mxu0 %vm1447_vm9, %v1416_v3 }
 0x325   : > { %v1619_v9 = vpop.f32.mrf.mxu2 }
 0x326   : > { %1679 = vst [vmem:[%s3762_s3 + $0x90] sm:$0xff] %v1619_v9  ;;  %v1129_v63 = vpop.permute.xlu1 %1128  ;;  %v1571_v4 = vpop.f32.mrf.mxu0 }
 0x327   : > { %v1047_v17 = vpop.permute.xlu0 %1046  ;;  %1663 = vst [vmem:[%s3762_s3 + $0x10] sm:$0xff] %v1571_v4  ;;  %v1433_v28 = vsel %vm1409_vm8, %v1400_v58, %v1129_v63 }
 0x328   : > { %v1408_v42 = vsel %vm1376_vm7, %v1375_v39, %v1047_v17  ;;  %1845 = vmatmul.msk.f32.gmra.mxu2 %vm1447_vm9, %v1433_v28 }
 0x329   : > { %v1441_v5 = vsel %vm1409_vm8, %v1408_v42, %v1145_v23 }
 0x32a   : > { %1853 = vmatmul.msk.f32.gmra.mxu3 %vm1447_vm9, %v1441_v5 }
 0x32c   : > { %v1643_v16 = vpop.f32.mrf.mxu3 }
 0x32d   : > { %1687 = vst [vmem:[%s3762_s3 + $0xd0] sm:$0xff] %v1643_v16 }
 0x32e   : > { %v1015_v41 = vpop.permute.xlu1 %1014 }
 0x32f   : > { %v999_v53 = vpop.permute.xlu0 %998  ;;  %v1392_v26 = vsel %vm1376_vm7, %v3560_v11, %v1015_v41 }
 0x330   : > { %v1384_v21 = vsel %vm1376_vm7, %v3386_v54, %v999_v53 }
 0x331   : > { %v1417_v0 = vsel %vm1409_vm8, %v1384_v21, %v1097_v46 }
 0x332   : > { %1829 = vmatmul.msk.f32.gmra.mxu0 %vm1447_vm9, %v1417_v0 }
 0x336   : > { %v1595_v36 = vpop.f32.mrf.mxu1 }
 0x337   : > { %1671 = vst [vmem:[%s3762_s3 + $0x50] sm:$0xff] %v1595_v36  ;;  %v1113_v14 = vpop.permute.xlu0 %1112 }
 0x338   : > { %v1425_v25 = vsel %vm1409_vm8, %v1392_v26, %v1113_v14 }
 0x339   : > { %1837 = vmatmul.msk.f32.gmra.mxu1 %vm1447_vm9, %v1425_v25 }
 0x343   : > { %v1646_v54 = vpop.f32.mrf.mxu3 }
 0x344   : > { %v1622_v7 = vpop.f32.mrf.mxu2  ;;  %1688 = vst [vmem:[%s3762_s3 + $0xd8] sm:$0xff] %v1646_v54 }
 0x345   : > { %1680 = vst [vmem:[%s3762_s3 + $0x98] sm:$0xff] %v1622_v7 }
 0x34d   : > { %v1598_v32 = vpop.f32.mrf.mxu1 }
 0x34e   : > { %v1574_v38 = vpop.f32.mrf.mxu0  ;;  %1672 = vst [vmem:[%s3762_s3 + $0x58] sm:$0xff] %v1598_v32 }
 0x34f   : > { %1664 = vst [vmem:[%s3762_s3 + $0x18] sm:$0xff] %v1574_v38 }
 0x35b   : > { %v1625_v11 = vpop.f32.mrf.mxu2 }
 0x35c   : > { %1681 = vst [vmem:[%s3762_s3 + $0xa0] sm:$0xff] %v1625_v11 }
 0x35d   : > { %v1649_v52 = vpop.f32.mrf.mxu3 }
 0x35e   : > { %1689 = vst [vmem:[%s3762_s3 + $0xe0] sm:$0xff] %v1649_v52  ;;  %v1601_v33 = vpop.f32.mrf.mxu1 }
 0x35f   : > { %1673 = vst [vmem:[%s3762_s3 + $0x60] sm:$0xff] %v1601_v33 }
 0x365   : > { %v1577_v2 = vpop.f32.mrf.mxu0 }
 0x366   : > { %1665 = vst [vmem:[%s3762_s3 + $0x20] sm:$0xff] %v1577_v2 }
 0x375   : > { %v1628_v34 = vpop.f32.mrf.mxu2 }
 0x376   : > { %1682 = vst [vmem:[%s3762_s3 + $0xa8] sm:$0xff] %v1628_v34  ;;  %v1580_v24 = vpop.f32.mrf.mxu0 }
 0x377   : > { %1666 = vst [vmem:[%s3762_s3 + $0x28] sm:$0xff] %v1580_v24 }
 0x37c   : > { %v1652_v30 = vpop.f32.mrf.mxu3 }
 0x37d   : > { %1690 = vst [vmem:[%s3762_s3 + $0xe8] sm:$0xff] %v1652_v30 }
 0x386   : > { %v1604_v49 = vpop.f32.mrf.mxu1 }
 0x387   : > { %1674 = vst [vmem:[%s3762_s3 + $0x68] sm:$0xff] %v1604_v49 }
 0x393   : > { %v1655_v45 = vpop.f32.mrf.mxu3 }
 0x394   : > { %v1631_v37 = vpop.f32.mrf.mxu2  ;;  %1691 = vst [vmem:[%s3762_s3 + $0xf0] sm:$0xff] %v1655_v45 }
 0x395   : > { %1683 = vst [vmem:[%s3762_s3 + $0xb0] sm:$0xff] %v1631_v37 }
 0x39d   : > { %v1607_v20 = vpop.f32.mrf.mxu1 }
 0x39e   : > { %v1583_v15 = vpop.f32.mrf.mxu0  ;;  %1675 = vst [vmem:[%s3762_s3 + $0x70] sm:$0xff] %v1607_v20 }
 0x39f   : > { %1667 = vst [vmem:[%s3762_s3 + $0x30] sm:$0xff] %v1583_v15 }
 0x3ab   : > { %v1634_v29 = vpop.f32.mrf.mxu2 }
 0x3ac   : > { %1684 = vst [vmem:[%s3762_s3 + $0xb8] sm:$0xff] %v1634_v29 }
 0x3ad   : > { %v1658_v27 = vpop.f32.mrf.mxu3 }
 0x3ae   : > { %1692 = vst [vmem:[%s3762_s3 + $0xf8] sm:$0xff] %v1658_v27 }
 0x3af   : > { %v1586_v50 = vpop.f32.mrf.mxu0 }
 0x3b0   : > { %1668 = vst [vmem:[%s3762_s3 + $0x38] sm:$0xff] %v1586_v50 }
 0x3b6   : > { %v1610_v6 = vpop.f32.mrf.mxu1 }
 0x3b7   : > { %1676 = vst [vmem:[%s3762_s3 + $0x78] sm:$0xff] %v1610_v6 }
 0x3b8   : > { %2010 = shalt.err (!%p2007_p5)
}
 0x3b9   : > { %s2071_s28 = smov 128  }
 0x3ba   : > { %1876 = dma.vmem_to_hbm [thread:$0]  (%p2127_p4), %s1710_s8, 4096, %s1712_s15, %s1694_s16, %s2071_s28, %s2071_s28, %s2064_s29  }
 0x3bb PF: > { %p1882_p6 = scmp.ge.s32.totalorder %s2061_s14, 2  ;;  %s1726_s27 = sand.u32 1, %s2041_s9  }
 0x3bc   : > { %s1727_s30 = scalar_lea.sflag [#allocation3], %s1726_s27 }
 0x3bd   : > { %p1879_p7 = pnand %p1882_p6, %p2134_p8 }
 0x3bf   : > { %p1880_p9 = pneg %p1879_p7 }
 0x3c1   : > { %2036 = dma.done.wait (%p1880_p9), %s1727_s30, 4096  }
 0x3c2   : > { %2038 = vsyncadd (%p1880_p9), %s1727_s30, 4294963200  ;;  %s15_s14 = sadd.s32 1, %s2061_s14   ;;  %s4262_s9 = smov %s2045_s10 }
 0x3c3   : > { %p12_p10 = scmp.ge.s32.totalorder %s15_s14, 4   ;;  %s4263_s10 = smov %s2049_s11 }
 0x3c4   : > { %s4264_s11 = smov %s2140_s22  ;;  %s4265_s12 = smov %s2057_s13 }
 0x3c5   : > { %s4266_s13 = smov %s4268_s17  ;;  %14 = sbr.rel (!%p12_p10) target bundleno = 4 (0x4), region = 66 }
 0x3ca   :  { %1733 = vsyncpa [#allocation3], 1 }
 0x3cb   :  { %1735 = vsyncpa [#allocation3 + $0x1], 1 }

</bundles_post_ra>
